<compile_context>
chip_gen: v6e
topology: v6e:2x2x1
jax: 0.10.0
libtpu: 0.0.40
codegen_flags: <defaults>
</compile_context>

<pallas_src>
import jax
import jax.numpy as jnp
from jax.experimental import pallas as pl
from jax.experimental.pallas import tpu as pltpu


def _align8(n: int) -> int:
    return ((n + 7) // 8) * 8


def _param_offsets(hidden_size: int, input_size: int):
    """Row offsets of each section inside the packed parameter array (8-row aligned)."""
    off_whh = 0                                  # H rows : w_hh^T          (H, 4H)
    off_wih = off_whh + _align8(hidden_size)     # I rows : w_ih^T          (I, 4H)
    off_b = off_wih + _align8(input_size)        # 1 row  : b_ih + b_hh     (1, 4H)
    off_wfc = off_b + 8                          # H rows : w_fc^T (padded) (H, 4H)
    off_bfc = off_wfc + _align8(hidden_size)     # 1 row  : b_fc  (padded)  (1, 4H)
    rows = off_bfc + 8
    return off_whh, off_wih, off_b, off_wfc, off_bfc, rows


def _sigmoid_1eup(x):
    # sigmoid(x) == 0.5 * tanh(0.5 * x) + 0.5 : exactly one EUP push + cheap VPU ops.
    return 0.5 * jnp.tanh(0.5 * x) + 0.5


def fire_lstm_kernel(x_ref, p_ref, out_ref):
    # x_ref  : (B, T, I)   f32, native batch_first layout
    # p_ref  : (rows, 4H)  f32, packed parameters (see prepare_fire_lstm_params)
    # out_ref: (B, O)      f32
    B, T, I = x_ref.shape
    G = p_ref.shape[1]          # 4*H
    H = G // 4
    O = out_ref.shape[1]
    off_whh, off_wih, off_b, off_wfc, off_bfc, _ = _param_offsets(H, I)

    # ---- unpack parameters (once, off the recurrence critical path) ----
    whh_bf = p_ref[off_whh:off_whh + H, :].astype(jnp.bfloat16)        # (H, 4H) bf16
    # Per-gate (H, H) blocks: four single-pass bf16 matmuls per step; the gate extraction
    # no longer happens on the matmul *result* (serial chain), only on static weights here.
    whh_g = [whh_bf[:, g * H:(g + 1) * H] for g in range(4)]           # 4 x (H, H) bf16
    wih = p_ref[off_wih:off_wih + I, :]                                # (I, 4H) f32
    b_row = p_ref[off_b:off_b + 1, :]                                  # (1, 4H) f32

    # ---- hoisted input projection for all timesteps (VPU broadcast FMAs, K == I tiny) ----
    x_all = x_ref[...]                                                 # (B, T, I) f32
    xg = []                                                            # T x (B, 4H) f32
    for t in range(T):
        s = x_all[:, t, 0:1] * wih[0:1, :]                             # (B, 4H)
        for k in range(1, I):
            s = s + x_all[:, t, k:k + 1] * wih[k:k + 1, :]
        xg.append(s + b_row)

    # ---- recurrence: fully unrolled (T static & small), PyTorch gate order [i, f, g, o] ----
    h = jnp.zeros((B, H), jnp.float32)
    c = jnp.zeros((B, H), jnp.float32)
    for t in range(T):
        if t == 0:
            # h == 0: skip the four matmuls entirely on the first step.
            pre = [xg[0][:, g * H:(g + 1) * H] for g in range(4)]
        else:
            h_bf = h.astype(jnp.bfloat16)
            pre = [
                xg[t][:, g * H:(g + 1) * H]
                + jnp.dot(h_bf, whh_g[g], preferred_element_type=jnp.float32)
                for g in range(4)
            ]
        i_g = _sigmoid_1eup(pre[0])
        f_g = _sigmoid_1eup(pre[1])
        g_g = jnp.tanh(pre[2])
        o_g = _sigmoid_1eup(pre[3])
        c = f_g * c + i_g * g_g
        h = o_g * jnp.tanh(c)

    # ---- final Linear on the last hidden state ----
    wfc = p_ref[off_wfc:off_wfc + H, 0:O]                              # (H, O) f32
    bfc = p_ref[off_bfc:off_bfc + 1, 0:O]                              # (1, O) f32
    out_ref[...] = jnp.dot(h, wfc, preferred_element_type=jnp.float32) + bfc


def prepare_fire_lstm_params(w_ih, w_hh, b_ih, b_hh, w_fc, b_fc):
    """One-time parameter re-layout (kept OFF the per-call forward path).

    Packs all LSTM + FC parameters into a single (rows, 4H) f32 array so the kernel
    needs exactly one parameter DMA.  Gate order matches PyTorch [i, f, g, o].
    """
    G, I = w_ih.shape            # (4H, I)
    H = G // 4
    O = w_fc.shape[0]
    off_whh, off_wih, off_b, off_wfc, off_bfc, rows = _param_offsets(H, I)
    p = jnp.zeros((rows, G), jnp.float32)
    p = p.at[off_whh:off_whh + H, :].set(jnp.transpose(w_hh).astype(jnp.float32))
    p = p.at[off_wih:off_wih + I, :].set(jnp.transpose(w_ih).astype(jnp.float32))
    p = p.at[off_b, :].set((b_ih + b_hh).astype(jnp.float32))
    p = p.at[off_wfc:off_wfc + H, 0:O].set(jnp.transpose(w_fc).astype(jnp.float32))
    p = p.at[off_bfc, 0:O].set(b_fc.astype(jnp.float32))
    return p


def fire_lstm_forward(x_bti, packed_params, *, out_features=2):
    """x_bti: (B, T, I) batch_first input (like PyTorch). Returns (B, out_features)."""
    B, T, I = x_bti.shape
    G = packed_params.shape[1]
    H = G // 4

    # Advisory cost estimate: tiny, serial-latency-bound kernel.
    flops = 2 * T * B * I * G + 2 * (T - 1) * B * H * G + 2 * B * H * out_features
    transcendentals = 5 * T * B * H          # 3 sigmoid-tanh + tanh(g) + tanh(c) per step
    bytes_accessed = 4 * (B * T * I + packed_params.size + B * out_features)

    vmem = pl.BlockSpec(memory_space=pltpu.MemorySpace.VMEM)
    return pl.pallas_call(
        fire_lstm_kernel,
        out_shape=jax.ShapeDtypeStruct((B, out_features), jnp.float32),
        in_specs=[vmem, vmem],
        out_specs=vmem,
        cost_estimate=pl.CostEstimate(
            flops=flops,
            transcendentals=transcendentals,
            bytes_accessed=bytes_accessed,
        ),
    )(x_bti.astype(jnp.float32), packed_params)


def _pure_jax_reference(x_bti, w_ih, w_hh, b_ih, b_hh, w_fc, b_fc):
    B, T, I = x_bti.shape
    H = w_hh.shape[1]
    h = jnp.zeros((B, H), jnp.float32)
    c = jnp.zeros((B, H), jnp.float32)
    for t in range(T):
        gates = x_bti[:, t, :] @ w_ih.T + h @ w_hh.T + b_ih + b_hh
        i_g = jax.nn.sigmoid(gates[:, 0 * H:1 * H])
        f_g = jax.nn.sigmoid(gates[:, 1 * H:2 * H])
        g_g = jnp.tanh(gates[:, 2 * H:3 * H])
        o_g = jax.nn.sigmoid(gates[:, 3 * H:4 * H])
        c = f_g * c + i_g * g_g
        h = o_g * jnp.tanh(c)
    return h @ w_fc.T + b_fc


if __name__ == "__main__":
    # Module hyperparameters (from FireLSTM.__init__).
    input_size, hidden_size = 2, 32
    batch, seq = 2, 8

    key = jax.random.PRNGKey(0)
    ks = jax.random.split(key, 7)
    bound = 1.0 / (hidden_size ** 0.5)  # PyTorch-style uniform init bound

    # Deterministic synthetic parameters (shapes match nn.LSTM / nn.Linear).
    w_ih = jax.random.uniform(ks[0], (4 * hidden_size, input_size), jnp.float32, -bound, bound)
    w_hh = jax.random.uniform(ks[1], (4 * hidden_size, hidden_size), jnp.float32, -bound, bound)
    b_ih = jax.random.uniform(ks[2], (4 * hidden_size,), jnp.float32, -bound, bound)
    b_hh = jax.random.uniform(ks[3], (4 * hidden_size,), jnp.float32, -bound, bound)
    w_fc = jax.random.uniform(ks[4], (2, hidden_size), jnp.float32, -bound, bound)
    b_fc = jax.random.uniform(ks[5], (2,), jnp.float32, -bound, bound)

    x = jax.random.normal(ks[6], (batch, seq, input_size), jnp.float32)

    packed = prepare_fire_lstm_params(w_ih, w_hh, b_ih, b_hh, w_fc, b_fc)  # one-time prep
    out = fire_lstm_forward(x, packed, out_features=2)
    jax.block_until_ready(out)

    ref = _pure_jax_reference(x, w_ih, w_hh, b_ih, b_hh, w_fc, b_fc)
    assert out.shape == (batch, 2)
    # Recurrence matmuls use bf16 MXU operands (f32 accumulation), so allow bf16-level
    # rounding compounded over the 8-step h->h chain vs. the pure-f32 reference.
    assert jnp.allclose(out, ref, atol=2e-2, rtol=2e-2), (out, ref)

    print("KERNEL_OK")
</pallas_src>

<mosaic_0001>
module attributes {stable_mosaic.version = 11 : i64} {
  func.func @fire_lstm_kernel(%arg0: memref<2x8x2xf32, #tpu.memory_space<vmem>>, %arg1: memref<88x128xf32, #tpu.memory_space<vmem>>, %arg2: memref<2x2xf32, #tpu.memory_space<vmem>>) attributes {dimension_semantics = [], scalar_prefetch = 0 : i64, scratch_operands = 0 : i64, tpu.core_type = #tpu.core_type<tc>} {
    %c0 = arith.constant 0 : index
    %c0_0 = arith.constant 0 : index
    %0 = vector.load %arg1[%c0, %c0_0] : memref<88x128xf32, #tpu.memory_space<vmem>>, vector<32x128xf32>
    %1 = arith.truncf %0 : vector<32x128xf32> to vector<32x128xbf16>
    %2 = vector.extract_strided_slice %1 {offsets = [0, 0], sizes = [32, 32], strides = [1, 1]} : vector<32x128xbf16> to vector<32x32xbf16>
    %3 = vector.extract_strided_slice %1 {offsets = [0, 32], sizes = [32, 32], strides = [1, 1]} : vector<32x128xbf16> to vector<32x32xbf16>
    %4 = vector.extract_strided_slice %1 {offsets = [0, 64], sizes = [32, 32], strides = [1, 1]} : vector<32x128xbf16> to vector<32x32xbf16>
    %5 = vector.extract_strided_slice %1 {offsets = [0, 96], sizes = [32, 32], strides = [1, 1]} : vector<32x128xbf16> to vector<32x32xbf16>
    %c32 = arith.constant 32 : index
    %c0_1 = arith.constant 0 : index
    %6 = vector.load %arg1[%c32, %c0_1] : memref<88x128xf32, #tpu.memory_space<vmem>>, vector<2x128xf32>
    %c40 = arith.constant 40 : index
    %c0_2 = arith.constant 0 : index
    %7 = vector.load %arg1[%c40, %c0_2] : memref<88x128xf32, #tpu.memory_space<vmem>>, vector<1x128xf32>
    %c0_3 = arith.constant 0 : index
    %c0_4 = arith.constant 0 : index
    %c0_5 = arith.constant 0 : index
    %8 = vector.load %arg0[%c0_3, %c0_4, %c0_5] : memref<2x8x2xf32, #tpu.memory_space<vmem>>, vector<2x8x2xf32>
    %9 = vector.extract_strided_slice %8 {offsets = [0, 0, 0], sizes = [2, 1, 1], strides = [1, 1, 1]} : vector<2x8x2xf32> to vector<2x1x1xf32>
    %10 = vector.shape_cast %9 : vector<2x1x1xf32> to vector<2x1xf32>
    %11 = vector.extract_strided_slice %6 {offsets = [0, 0], sizes = [1, 128], strides = [1, 1]} : vector<2x128xf32> to vector<1x128xf32>
    %12 = vector.broadcast %10 : vector<2x1xf32> to vector<2x128xf32>
    %13 = vector.broadcast %11 : vector<1x128xf32> to vector<2x128xf32>
    %14 = arith.mulf %12, %13 : vector<2x128xf32>
    %15 = vector.extract_strided_slice %8 {offsets = [0, 0, 1], sizes = [2, 1, 1], strides = [1, 1, 1]} : vector<2x8x2xf32> to vector<2x1x1xf32>
    %16 = vector.shape_cast %15 : vector<2x1x1xf32> to vector<2x1xf32>
    %17 = vector.extract_strided_slice %6 {offsets = [1, 0], sizes = [1, 128], strides = [1, 1]} : vector<2x128xf32> to vector<1x128xf32>
    %18 = vector.broadcast %16 : vector<2x1xf32> to vector<2x128xf32>
    %19 = vector.broadcast %17 : vector<1x128xf32> to vector<2x128xf32>
    %20 = arith.mulf %18, %19 : vector<2x128xf32>
    %21 = arith.addf %14, %20 : vector<2x128xf32>
    %22 = vector.broadcast %7 : vector<1x128xf32> to vector<2x128xf32>
    %23 = arith.addf %21, %22 : vector<2x128xf32>
    %24 = vector.extract_strided_slice %8 {offsets = [0, 1, 0], sizes = [2, 1, 1], strides = [1, 1, 1]} : vector<2x8x2xf32> to vector<2x1x1xf32>
    %25 = vector.shape_cast %24 : vector<2x1x1xf32> to vector<2x1xf32>
    %26 = vector.extract_strided_slice %6 {offsets = [0, 0], sizes = [1, 128], strides = [1, 1]} : vector<2x128xf32> to vector<1x128xf32>
    %27 = vector.broadcast %25 : vector<2x1xf32> to vector<2x128xf32>
    %28 = vector.broadcast %26 : vector<1x128xf32> to vector<2x128xf32>
    %29 = arith.mulf %27, %28 : vector<2x128xf32>
    %30 = vector.extract_strided_slice %8 {offsets = [0, 1, 1], sizes = [2, 1, 1], strides = [1, 1, 1]} : vector<2x8x2xf32> to vector<2x1x1xf32>
    %31 = vector.shape_cast %30 : vector<2x1x1xf32> to vector<2x1xf32>
    %32 = vector.extract_strided_slice %6 {offsets = [1, 0], sizes = [1, 128], strides = [1, 1]} : vector<2x128xf32> to vector<1x128xf32>
    %33 = vector.broadcast %31 : vector<2x1xf32> to vector<2x128xf32>
    %34 = vector.broadcast %32 : vector<1x128xf32> to vector<2x128xf32>
    %35 = arith.mulf %33, %34 : vector<2x128xf32>
    %36 = arith.addf %29, %35 : vector<2x128xf32>
    %37 = vector.broadcast %7 : vector<1x128xf32> to vector<2x128xf32>
    %38 = arith.addf %36, %37 : vector<2x128xf32>
    %39 = vector.extract_strided_slice %8 {offsets = [0, 2, 0], sizes = [2, 1, 1], strides = [1, 1, 1]} : vector<2x8x2xf32> to vector<2x1x1xf32>
    %40 = vector.shape_cast %39 : vector<2x1x1xf32> to vector<2x1xf32>
    %41 = vector.extract_strided_slice %6 {offsets = [0, 0], sizes = [1, 128], strides = [1, 1]} : vector<2x128xf32> to vector<1x128xf32>
    %42 = vector.broadcast %40 : vector<2x1xf32> to vector<2x128xf32>
    %43 = vector.broadcast %41 : vector<1x128xf32> to vector<2x128xf32>
    %44 = arith.mulf %42, %43 : vector<2x128xf32>
    %45 = vector.extract_strided_slice %8 {offsets = [0, 2, 1], sizes = [2, 1, 1], strides = [1, 1, 1]} : vector<2x8x2xf32> to vector<2x1x1xf32>
    %46 = vector.shape_cast %45 : vector<2x1x1xf32> to vector<2x1xf32>
    %47 = vector.extract_strided_slice %6 {offsets = [1, 0], sizes = [1, 128], strides = [1, 1]} : vector<2x128xf32> to vector<1x128xf32>
    %48 = vector.broadcast %46 : vector<2x1xf32> to vector<2x128xf32>
    %49 = vector.broadcast %47 : vector<1x128xf32> to vector<2x128xf32>
    %50 = arith.mulf %48, %49 : vector<2x128xf32>
    %51 = arith.addf %44, %50 : vector<2x128xf32>
    %52 = vector.broadcast %7 : vector<1x128xf32> to vector<2x128xf32>
    %53 = arith.addf %51, %52 : vector<2x128xf32>
    %54 = vector.extract_strided_slice %8 {offsets = [0, 3, 0], sizes = [2, 1, 1], strides = [1, 1, 1]} : vector<2x8x2xf32> to vector<2x1x1xf32>
    %55 = vector.shape_cast %54 : vector<2x1x1xf32> to vector<2x1xf32>
    %56 = vector.extract_strided_slice %6 {offsets = [0, 0], sizes = [1, 128], strides = [1, 1]} : vector<2x128xf32> to vector<1x128xf32>
    %57 = vector.broadcast %55 : vector<2x1xf32> to vector<2x128xf32>
    %58 = vector.broadcast %56 : vector<1x128xf32> to vector<2x128xf32>
    %59 = arith.mulf %57, %58 : vector<2x128xf32>
    %60 = vector.extract_strided_slice %8 {offsets = [0, 3, 1], sizes = [2, 1, 1], strides = [1, 1, 1]} : vector<2x8x2xf32> to vector<2x1x1xf32>
    %61 = vector.shape_cast %60 : vector<2x1x1xf32> to vector<2x1xf32>
    %62 = vector.extract_strided_slice %6 {offsets = [1, 0], sizes = [1, 128], strides = [1, 1]} : vector<2x128xf32> to vector<1x128xf32>
    %63 = vector.broadcast %61 : vector<2x1xf32> to vector<2x128xf32>
    %64 = vector.broadcast %62 : vector<1x128xf32> to vector<2x128xf32>
    %65 = arith.mulf %63, %64 : vector<2x128xf32>
    %66 = arith.addf %59, %65 : vector<2x128xf32>
    %67 = vector.broadcast %7 : vector<1x128xf32> to vector<2x128xf32>
    %68 = arith.addf %66, %67 : vector<2x128xf32>
    %69 = vector.extract_strided_slice %8 {offsets = [0, 4, 0], sizes = [2, 1, 1], strides = [1, 1, 1]} : vector<2x8x2xf32> to vector<2x1x1xf32>
    %70 = vector.shape_cast %69 : vector<2x1x1xf32> to vector<2x1xf32>
    %71 = vector.extract_strided_slice %6 {offsets = [0, 0], sizes = [1, 128], strides = [1, 1]} : vector<2x128xf32> to vector<1x128xf32>
    %72 = vector.broadcast %70 : vector<2x1xf32> to vector<2x128xf32>
    %73 = vector.broadcast %71 : vector<1x128xf32> to vector<2x128xf32>
    %74 = arith.mulf %72, %73 : vector<2x128xf32>
    %75 = vector.extract_strided_slice %8 {offsets = [0, 4, 1], sizes = [2, 1, 1], strides = [1, 1, 1]} : vector<2x8x2xf32> to vector<2x1x1xf32>
    %76 = vector.shape_cast %75 : vector<2x1x1xf32> to vector<2x1xf32>
    %77 = vector.extract_strided_slice %6 {offsets = [1, 0], sizes = [1, 128], strides = [1, 1]} : vector<2x128xf32> to vector<1x128xf32>
    %78 = vector.broadcast %76 : vector<2x1xf32> to vector<2x128xf32>
    %79 = vector.broadcast %77 : vector<1x128xf32> to vector<2x128xf32>
    %80 = arith.mulf %78, %79 : vector<2x128xf32>
    %81 = arith.addf %74, %80 : vector<2x128xf32>
    %82 = vector.broadcast %7 : vector<1x128xf32> to vector<2x128xf32>
    %83 = arith.addf %81, %82 : vector<2x128xf32>
    %84 = vector.extract_strided_slice %8 {offsets = [0, 5, 0], sizes = [2, 1, 1], strides = [1, 1, 1]} : vector<2x8x2xf32> to vector<2x1x1xf32>
    %85 = vector.shape_cast %84 : vector<2x1x1xf32> to vector<2x1xf32>
    %86 = vector.extract_strided_slice %6 {offsets = [0, 0], sizes = [1, 128], strides = [1, 1]} : vector<2x128xf32> to vector<1x128xf32>
    %87 = vector.broadcast %85 : vector<2x1xf32> to vector<2x128xf32>
    %88 = vector.broadcast %86 : vector<1x128xf32> to vector<2x128xf32>
    %89 = arith.mulf %87, %88 : vector<2x128xf32>
    %90 = vector.extract_strided_slice %8 {offsets = [0, 5, 1], sizes = [2, 1, 1], strides = [1, 1, 1]} : vector<2x8x2xf32> to vector<2x1x1xf32>
    %91 = vector.shape_cast %90 : vector<2x1x1xf32> to vector<2x1xf32>
    %92 = vector.extract_strided_slice %6 {offsets = [1, 0], sizes = [1, 128], strides = [1, 1]} : vector<2x128xf32> to vector<1x128xf32>
    %93 = vector.broadcast %91 : vector<2x1xf32> to vector<2x128xf32>
    %94 = vector.broadcast %92 : vector<1x128xf32> to vector<2x128xf32>
    %95 = arith.mulf %93, %94 : vector<2x128xf32>
    %96 = arith.addf %89, %95 : vector<2x128xf32>
    %97 = vector.broadcast %7 : vector<1x128xf32> to vector<2x128xf32>
    %98 = arith.addf %96, %97 : vector<2x128xf32>
    %99 = vector.extract_strided_slice %8 {offsets = [0, 6, 0], sizes = [2, 1, 1], strides = [1, 1, 1]} : vector<2x8x2xf32> to vector<2x1x1xf32>
    %100 = vector.shape_cast %99 : vector<2x1x1xf32> to vector<2x1xf32>
    %101 = vector.extract_strided_slice %6 {offsets = [0, 0], sizes = [1, 128], strides = [1, 1]} : vector<2x128xf32> to vector<1x128xf32>
    %102 = vector.broadcast %100 : vector<2x1xf32> to vector<2x128xf32>
    %103 = vector.broadcast %101 : vector<1x128xf32> to vector<2x128xf32>
    %104 = arith.mulf %102, %103 : vector<2x128xf32>
    %105 = vector.extract_strided_slice %8 {offsets = [0, 6, 1], sizes = [2, 1, 1], strides = [1, 1, 1]} : vector<2x8x2xf32> to vector<2x1x1xf32>
    %106 = vector.shape_cast %105 : vector<2x1x1xf32> to vector<2x1xf32>
    %107 = vector.extract_strided_slice %6 {offsets = [1, 0], sizes = [1, 128], strides = [1, 1]} : vector<2x128xf32> to vector<1x128xf32>
    %108 = vector.broadcast %106 : vector<2x1xf32> to vector<2x128xf32>
    %109 = vector.broadcast %107 : vector<1x128xf32> to vector<2x128xf32>
    %110 = arith.mulf %108, %109 : vector<2x128xf32>
    %111 = arith.addf %104, %110 : vector<2x128xf32>
    %112 = vector.broadcast %7 : vector<1x128xf32> to vector<2x128xf32>
    %113 = arith.addf %111, %112 : vector<2x128xf32>
    %114 = vector.extract_strided_slice %8 {offsets = [0, 7, 0], sizes = [2, 1, 1], strides = [1, 1, 1]} : vector<2x8x2xf32> to vector<2x1x1xf32>
    %115 = vector.shape_cast %114 : vector<2x1x1xf32> to vector<2x1xf32>
    %116 = vector.extract_strided_slice %6 {offsets = [0, 0], sizes = [1, 128], strides = [1, 1]} : vector<2x128xf32> to vector<1x128xf32>
    %117 = vector.broadcast %115 : vector<2x1xf32> to vector<2x128xf32>
    %118 = vector.broadcast %116 : vector<1x128xf32> to vector<2x128xf32>
    %119 = arith.mulf %117, %118 : vector<2x128xf32>
    %120 = vector.extract_strided_slice %8 {offsets = [0, 7, 1], sizes = [2, 1, 1], strides = [1, 1, 1]} : vector<2x8x2xf32> to vector<2x1x1xf32>
    %121 = vector.shape_cast %120 : vector<2x1x1xf32> to vector<2x1xf32>
    %122 = vector.extract_strided_slice %6 {offsets = [1, 0], sizes = [1, 128], strides = [1, 1]} : vector<2x128xf32> to vector<1x128xf32>
    %123 = vector.broadcast %121 : vector<2x1xf32> to vector<2x128xf32>
    %124 = vector.broadcast %122 : vector<1x128xf32> to vector<2x128xf32>
    %125 = arith.mulf %123, %124 : vector<2x128xf32>
    %126 = arith.addf %119, %125 : vector<2x128xf32>
    %127 = vector.broadcast %7 : vector<1x128xf32> to vector<2x128xf32>
    %128 = arith.addf %126, %127 : vector<2x128xf32>
    %cst = arith.constant 0.000000e+00 : f32
    %129 = vector.broadcast %cst : f32 to vector<2x32xf32>
    %130 = vector.extract_strided_slice %23 {offsets = [0, 0], sizes = [2, 32], strides = [1, 1]} : vector<2x128xf32> to vector<2x32xf32>
    %131 = vector.extract_strided_slice %23 {offsets = [0, 32], sizes = [2, 32], strides = [1, 1]} : vector<2x128xf32> to vector<2x32xf32>
    %132 = vector.extract_strided_slice %23 {offsets = [0, 64], sizes = [2, 32], strides = [1, 1]} : vector<2x128xf32> to vector<2x32xf32>
    %133 = vector.extract_strided_slice %23 {offsets = [0, 96], sizes = [2, 32], strides = [1, 1]} : vector<2x128xf32> to vector<2x32xf32>
    %cst_6 = arith.constant 5.000000e-01 : f32
    %134 = vector.broadcast %cst_6 : f32 to vector<2x32xf32>
    %135 = arith.mulf %134, %130 : vector<2x32xf32>
    %136 = math.tanh %135 : vector<2x32xf32>
    %cst_7 = arith.constant 5.000000e-01 : f32
    %137 = vector.broadcast %cst_7 : f32 to vector<2x32xf32>
    %138 = arith.mulf %137, %136 : vector<2x32xf32>
    %cst_8 = arith.constant 5.000000e-01 : f32
    %139 = vector.broadcast %cst_8 : f32 to vector<2x32xf32>
    %140 = arith.addf %138, %139 : vector<2x32xf32>
    %cst_9 = arith.constant 5.000000e-01 : f32
    %141 = vector.broadcast %cst_9 : f32 to vector<2x32xf32>
    %142 = arith.mulf %141, %131 : vector<2x32xf32>
    %143 = math.tanh %142 : vector<2x32xf32>
    %cst_10 = arith.constant 5.000000e-01 : f32
    %144 = vector.broadcast %cst_10 : f32 to vector<2x32xf32>
    %145 = arith.mulf %144, %143 : vector<2x32xf32>
    %cst_11 = arith.constant 5.000000e-01 : f32
    %146 = vector.broadcast %cst_11 : f32 to vector<2x32xf32>
    %147 = arith.addf %145, %146 : vector<2x32xf32>
    %148 = math.tanh %132 : vector<2x32xf32>
    %cst_12 = arith.constant 5.000000e-01 : f32
    %149 = vector.broadcast %cst_12 : f32 to vector<2x32xf32>
    %150 = arith.mulf %149, %133 : vector<2x32xf32>
    %151 = math.tanh %150 : vector<2x32xf32>
    %cst_13 = arith.constant 5.000000e-01 : f32
    %152 = vector.broadcast %cst_13 : f32 to vector<2x32xf32>
    %153 = arith.mulf %152, %151 : vector<2x32xf32>
    %cst_14 = arith.constant 5.000000e-01 : f32
    %154 = vector.broadcast %cst_14 : f32 to vector<2x32xf32>
    %155 = arith.addf %153, %154 : vector<2x32xf32>
    %156 = arith.mulf %147, %129 : vector<2x32xf32>
    %157 = arith.mulf %140, %148 : vector<2x32xf32>
    %158 = arith.addf %156, %157 : vector<2x32xf32>
    %159 = math.tanh %158 : vector<2x32xf32>
    %160 = arith.mulf %155, %159 : vector<2x32xf32>
    %161 = arith.truncf %160 : vector<2x32xf32> to vector<2x32xbf16>
    %162 = vector.extract_strided_slice %38 {offsets = [0, 0], sizes = [2, 32], strides = [1, 1]} : vector<2x128xf32> to vector<2x32xf32>
    %cst_15 = arith.constant dense<0.000000e+00> : vector<2x32xf32>
    %163 = tpu.matmul %161, %2, %cst_15 {dimension_numbers = #tpu.dot_dimension_numbers<[1], [0], [0], [1], [0, 0, 1, 1], [], []>} : vector<2x32xbf16>, vector<32x32xbf16>, vector<2x32xf32> -> vector<2x32xf32>
    %164 = arith.addf %162, %163 : vector<2x32xf32>
    %165 = vector.extract_strided_slice %38 {offsets = [0, 32], sizes = [2, 32], strides = [1, 1]} : vector<2x128xf32> to vector<2x32xf32>
    %cst_16 = arith.constant dense<0.000000e+00> : vector<2x32xf32>
    %166 = tpu.matmul %161, %3, %cst_16 {dimension_numbers = #tpu.dot_dimension_numbers<[1], [0], [0], [1], [0, 0, 1, 1], [], []>} : vector<2x32xbf16>, vector<32x32xbf16>, vector<2x32xf32> -> vector<2x32xf32>
    %167 = arith.addf %165, %166 : vector<2x32xf32>
    %168 = vector.extract_strided_slice %38 {offsets = [0, 64], sizes = [2, 32], strides = [1, 1]} : vector<2x128xf32> to vector<2x32xf32>
    %cst_17 = arith.constant dense<0.000000e+00> : vector<2x32xf32>
    %169 = tpu.matmul %161, %4, %cst_17 {dimension_numbers = #tpu.dot_dimension_numbers<[1], [0], [0], [1], [0, 0, 1, 1], [], []>} : vector<2x32xbf16>, vector<32x32xbf16>, vector<2x32xf32> -> vector<2x32xf32>
    %170 = arith.addf %168, %169 : vector<2x32xf32>
    %171 = vector.extract_strided_slice %38 {offsets = [0, 96], sizes = [2, 32], strides = [1, 1]} : vector<2x128xf32> to vector<2x32xf32>
    %cst_18 = arith.constant dense<0.000000e+00> : vector<2x32xf32>
    %172 = tpu.matmul %161, %5, %cst_18 {dimension_numbers = #tpu.dot_dimension_numbers<[1], [0], [0], [1], [0, 0, 1, 1], [], []>} : vector<2x32xbf16>, vector<32x32xbf16>, vector<2x32xf32> -> vector<2x32xf32>
    %173 = arith.addf %171, %172 : vector<2x32xf32>
    %cst_19 = arith.constant 5.000000e-01 : f32
    %174 = vector.broadcast %cst_19 : f32 to vector<2x32xf32>
    %175 = arith.mulf %174, %164 : vector<2x32xf32>
    %176 = math.tanh %175 : vector<2x32xf32>
    %cst_20 = arith.constant 5.000000e-01 : f32
    %177 = vector.broadcast %cst_20 : f32 to vector<2x32xf32>
    %178 = arith.mulf %177, %176 : vector<2x32xf32>
    %cst_21 = arith.constant 5.000000e-01 : f32
    %179 = vector.broadcast %cst_21 : f32 to vector<2x32xf32>
    %180 = arith.addf %178, %179 : vector<2x32xf32>
    %cst_22 = arith.constant 5.000000e-01 : f32
    %181 = vector.broadcast %cst_22 : f32 to vector<2x32xf32>
    %182 = arith.mulf %181, %167 : vector<2x32xf32>
    %183 = math.tanh %182 : vector<2x32xf32>
    %cst_23 = arith.constant 5.000000e-01 : f32
    %184 = vector.broadcast %cst_23 : f32 to vector<2x32xf32>
    %185 = arith.mulf %184, %183 : vector<2x32xf32>
    %cst_24 = arith.constant 5.000000e-01 : f32
    %186 = vector.broadcast %cst_24 : f32 to vector<2x32xf32>
    %187 = arith.addf %185, %186 : vector<2x32xf32>
    %188 = math.tanh %170 : vector<2x32xf32>
    %cst_25 = arith.constant 5.000000e-01 : f32
    %189 = vector.broadcast %cst_25 : f32 to vector<2x32xf32>
    %190 = arith.mulf %189, %173 : vector<2x32xf32>
    %191 = math.tanh %190 : vector<2x32xf32>
    %cst_26 = arith.constant 5.000000e-01 : f32
    %192 = vector.broadcast %cst_26 : f32 to vector<2x32xf32>
    %193 = arith.mulf %192, %191 : vector<2x32xf32>
    %cst_27 = arith.constant 5.000000e-01 : f32
    %194 = vector.broadcast %cst_27 : f32 to vector<2x32xf32>
    %195 = arith.addf %193, %194 : vector<2x32xf32>
    %196 = arith.mulf %187, %158 : vector<2x32xf32>
    %197 = arith.mulf %180, %188 : vector<2x32xf32>
    %198 = arith.addf %196, %197 : vector<2x32xf32>
    %199 = math.tanh %198 : vector<2x32xf32>
    %200 = arith.mulf %195, %199 : vector<2x32xf32>
    %201 = arith.truncf %200 : vector<2x32xf32> to vector<2x32xbf16>
    %202 = vector.extract_strided_slice %53 {offsets = [0, 0], sizes = [2, 32], strides = [1, 1]} : vector<2x128xf32> to vector<2x32xf32>
    %cst_28 = arith.constant dense<0.000000e+00> : vector<2x32xf32>
    %203 = tpu.matmul %201, %2, %cst_28 {dimension_numbers = #tpu.dot_dimension_numbers<[1], [0], [0], [1], [0, 0, 1, 1], [], []>} : vector<2x32xbf16>, vector<32x32xbf16>, vector<2x32xf32> -> vector<2x32xf32>
    %204 = arith.addf %202, %203 : vector<2x32xf32>
    %205 = vector.extract_strided_slice %53 {offsets = [0, 32], sizes = [2, 32], strides = [1, 1]} : vector<2x128xf32> to vector<2x32xf32>
    %cst_29 = arith.constant dense<0.000000e+00> : vector<2x32xf32>
    %206 = tpu.matmul %201, %3, %cst_29 {dimension_numbers = #tpu.dot_dimension_numbers<[1], [0], [0], [1], [0, 0, 1, 1], [], []>} : vector<2x32xbf16>, vector<32x32xbf16>, vector<2x32xf32> -> vector<2x32xf32>
    %207 = arith.addf %205, %206 : vector<2x32xf32>
    %208 = vector.extract_strided_slice %53 {offsets = [0, 64], sizes = [2, 32], strides = [1, 1]} : vector<2x128xf32> to vector<2x32xf32>
    %cst_30 = arith.constant dense<0.000000e+00> : vector<2x32xf32>
    %209 = tpu.matmul %201, %4, %cst_30 {dimension_numbers = #tpu.dot_dimension_numbers<[1], [0], [0], [1], [0, 0, 1, 1], [], []>} : vector<2x32xbf16>, vector<32x32xbf16>, vector<2x32xf32> -> vector<2x32xf32>
    %210 = arith.addf %208, %209 : vector<2x32xf32>
    %211 = vector.extract_strided_slice %53 {offsets = [0, 96], sizes = [2, 32], strides = [1, 1]} : vector<2x128xf32> to vector<2x32xf32>
    %cst_31 = arith.constant dense<0.000000e+00> : vector<2x32xf32>
    %212 = tpu.matmul %201, %5, %cst_31 {dimension_numbers = #tpu.dot_dimension_numbers<[1], [0], [0], [1], [0, 0, 1, 1], [], []>} : vector<2x32xbf16>, vector<32x32xbf16>, vector<2x32xf32> -> vector<2x32xf32>
    %213 = arith.addf %211, %212 : vector<2x32xf32>
    %cst_32 = arith.constant 5.000000e-01 : f32
    %214 = vector.broadcast %cst_32 : f32 to vector<2x32xf32>
    %215 = arith.mulf %214, %204 : vector<2x32xf32>
    %216 = math.tanh %215 : vector<2x32xf32>
    %cst_33 = arith.constant 5.000000e-01 : f32
    %217 = vector.broadcast %cst_33 : f32 to vector<2x32xf32>
    %218 = arith.mulf %217, %216 : vector<2x32xf32>
    %cst_34 = arith.constant 5.000000e-01 : f32
    %219 = vector.broadcast %cst_34 : f32 to vector<2x32xf32>
    %220 = arith.addf %218, %219 : vector<2x32xf32>
    %cst_35 = arith.constant 5.000000e-01 : f32
    %221 = vector.broadcast %cst_35 : f32 to vector<2x32xf32>
    %222 = arith.mulf %221, %207 : vector<2x32xf32>
    %223 = math.tanh %222 : vector<2x32xf32>
    %cst_36 = arith.constant 5.000000e-01 : f32
    %224 = vector.broadcast %cst_36 : f32 to vector<2x32xf32>
    %225 = arith.mulf %224, %223 : vector<2x32xf32>
    %cst_37 = arith.constant 5.000000e-01 : f32
    %226 = vector.broadcast %cst_37 : f32 to vector<2x32xf32>
    %227 = arith.addf %225, %226 : vector<2x32xf32>
    %228 = math.tanh %210 : vector<2x32xf32>
    %cst_38 = arith.constant 5.000000e-01 : f32
    %229 = vector.broadcast %cst_38 : f32 to vector<2x32xf32>
    %230 = arith.mulf %229, %213 : vector<2x32xf32>
    %231 = math.tanh %230 : vector<2x32xf32>
    %cst_39 = arith.constant 5.000000e-01 : f32
    %232 = vector.broadcast %cst_39 : f32 to vector<2x32xf32>
    %233 = arith.mulf %232, %231 : vector<2x32xf32>
    %cst_40 = arith.constant 5.000000e-01 : f32
    %234 = vector.broadcast %cst_40 : f32 to vector<2x32xf32>
    %235 = arith.addf %233, %234 : vector<2x32xf32>
    %236 = arith.mulf %227, %198 : vector<2x32xf32>
    %237 = arith.mulf %220, %228 : vector<2x32xf32>
    %238 = arith.addf %236, %237 : vector<2x32xf32>
    %239 = math.tanh %238 : vector<2x32xf32>
    %240 = arith.mulf %235, %239 : vector<2x32xf32>
    %241 = arith.truncf %240 : vector<2x32xf32> to vector<2x32xbf16>
    %242 = vector.extract_strided_slice %68 {offsets = [0, 0], sizes = [2, 32], strides = [1, 1]} : vector<2x128xf32> to vector<2x32xf32>
    %cst_41 = arith.constant dense<0.000000e+00> : vector<2x32xf32>
    %243 = tpu.matmul %241, %2, %cst_41 {dimension_numbers = #tpu.dot_dimension_numbers<[1], [0], [0], [1], [0, 0, 1, 1], [], []>} : vector<2x32xbf16>, vector<32x32xbf16>, vector<2x32xf32> -> vector<2x32xf32>
    %244 = arith.addf %242, %243 : vector<2x32xf32>
    %245 = vector.extract_strided_slice %68 {offsets = [0, 32], sizes = [2, 32], strides = [1, 1]} : vector<2x128xf32> to vector<2x32xf32>
    %cst_42 = arith.constant dense<0.000000e+00> : vector<2x32xf32>
    %246 = tpu.matmul %241, %3, %cst_42 {dimension_numbers = #tpu.dot_dimension_numbers<[1], [0], [0], [1], [0, 0, 1, 1], [], []>} : vector<2x32xbf16>, vector<32x32xbf16>, vector<2x32xf32> -> vector<2x32xf32>
    %247 = arith.addf %245, %246 : vector<2x32xf32>
    %248 = vector.extract_strided_slice %68 {offsets = [0, 64], sizes = [2, 32], strides = [1, 1]} : vector<2x128xf32> to vector<2x32xf32>
    %cst_43 = arith.constant dense<0.000000e+00> : vector<2x32xf32>
    %249 = tpu.matmul %241, %4, %cst_43 {dimension_numbers = #tpu.dot_dimension_numbers<[1], [0], [0], [1], [0, 0, 1, 1], [], []>} : vector<2x32xbf16>, vector<32x32xbf16>, vector<2x32xf32> -> vector<2x32xf32>
    %250 = arith.addf %248, %249 : vector<2x32xf32>
    %251 = vector.extract_strided_slice %68 {offsets = [0, 96], sizes = [2, 32], strides = [1, 1]} : vector<2x128xf32> to vector<2x32xf32>
    %cst_44 = arith.constant dense<0.000000e+00> : vector<2x32xf32>
    %252 = tpu.matmul %241, %5, %cst_44 {dimension_numbers = #tpu.dot_dimension_numbers<[1], [0], [0], [1], [0, 0, 1, 1], [], []>} : vector<2x32xbf16>, vector<32x32xbf16>, vector<2x32xf32> -> vector<2x32xf32>
    %253 = arith.addf %251, %252 : vector<2x32xf32>
    %cst_45 = arith.constant 5.000000e-01 : f32
    %254 = vector.broadcast %cst_45 : f32 to vector<2x32xf32>
    %255 = arith.mulf %254, %244 : vector<2x32xf32>
    %256 = math.tanh %255 : vector<2x32xf32>
    %cst_46 = arith.constant 5.000000e-01 : f32
    %257 = vector.broadcast %cst_46 : f32 to vector<2x32xf32>
    %258 = arith.mulf %257, %256 : vector<2x32xf32>
    %cst_47 = arith.constant 5.000000e-01 : f32
    %259 = vector.broadcast %cst_47 : f32 to vector<2x32xf32>
    %260 = arith.addf %258, %259 : vector<2x32xf32>
    %cst_48 = arith.constant 5.000000e-01 : f32
    %261 = vector.broadcast %cst_48 : f32 to vector<2x32xf32>
    %262 = arith.mulf %261, %247 : vector<2x32xf32>
    %263 = math.tanh %262 : vector<2x32xf32>
    %cst_49 = arith.constant 5.000000e-01 : f32
    %264 = vector.broadcast %cst_49 : f32 to vector<2x32xf32>
    %265 = arith.mulf %264, %263 : vector<2x32xf32>
    %cst_50 = arith.constant 5.000000e-01 : f32
    %266 = vector.broadcast %cst_50 : f32 to vector<2x32xf32>
    %267 = arith.addf %265, %266 : vector<2x32xf32>
    %268 = math.tanh %250 : vector<2x32xf32>
    %cst_51 = arith.constant 5.000000e-01 : f32
    %269 = vector.broadcast %cst_51 : f32 to vector<2x32xf32>
    %270 = arith.mulf %269, %253 : vector<2x32xf32>
    %271 = math.tanh %270 : vector<2x32xf32>
    %cst_52 = arith.constant 5.000000e-01 : f32
    %272 = vector.broadcast %cst_52 : f32 to vector<2x32xf32>
    %273 = arith.mulf %272, %271 : vector<2x32xf32>
    %cst_53 = arith.constant 5.000000e-01 : f32
    %274 = vector.broadcast %cst_53 : f32 to vector<2x32xf32>
    %275 = arith.addf %273, %274 : vector<2x32xf32>
    %276 = arith.mulf %267, %238 : vector<2x32xf32>
    %277 = arith.mulf %260, %268 : vector<2x32xf32>
    %278 = arith.addf %276, %277 : vector<2x32xf32>
    %279 = math.tanh %278 : vector<2x32xf32>
    %280 = arith.mulf %275, %279 : vector<2x32xf32>
    %281 = arith.truncf %280 : vector<2x32xf32> to vector<2x32xbf16>
    %282 = vector.extract_strided_slice %83 {offsets = [0, 0], sizes = [2, 32], strides = [1, 1]} : vector<2x128xf32> to vector<2x32xf32>
    %cst_54 = arith.constant dense<0.000000e+00> : vector<2x32xf32>
    %283 = tpu.matmul %281, %2, %cst_54 {dimension_numbers = #tpu.dot_dimension_numbers<[1], [0], [0], [1], [0, 0, 1, 1], [], []>} : vector<2x32xbf16>, vector<32x32xbf16>, vector<2x32xf32> -> vector<2x32xf32>
    %284 = arith.addf %282, %283 : vector<2x32xf32>
    %285 = vector.extract_strided_slice %83 {offsets = [0, 32], sizes = [2, 32], strides = [1, 1]} : vector<2x128xf32> to vector<2x32xf32>
    %cst_55 = arith.constant dense<0.000000e+00> : vector<2x32xf32>
    %286 = tpu.matmul %281, %3, %cst_55 {dimension_numbers = #tpu.dot_dimension_numbers<[1], [0], [0], [1], [0, 0, 1, 1], [], []>} : vector<2x32xbf16>, vector<32x32xbf16>, vector<2x32xf32> -> vector<2x32xf32>
    %287 = arith.addf %285, %286 : vector<2x32xf32>
    %288 = vector.extract_strided_slice %83 {offsets = [0, 64], sizes = [2, 32], strides = [1, 1]} : vector<2x128xf32> to vector<2x32xf32>
    %cst_56 = arith.constant dense<0.000000e+00> : vector<2x32xf32>
    %289 = tpu.matmul %281, %4, %cst_56 {dimension_numbers = #tpu.dot_dimension_numbers<[1], [0], [0], [1], [0, 0, 1, 1], [], []>} : vector<2x32xbf16>, vector<32x32xbf16>, vector<2x32xf32> -> vector<2x32xf32>
    %290 = arith.addf %288, %289 : vector<2x32xf32>
    %291 = vector.extract_strided_slice %83 {offsets = [0, 96], sizes = [2, 32], strides = [1, 1]} : vector<2x128xf32> to vector<2x32xf32>
    %cst_57 = arith.constant dense<0.000000e+00> : vector<2x32xf32>
    %292 = tpu.matmul %281, %5, %cst_57 {dimension_numbers = #tpu.dot_dimension_numbers<[1], [0], [0], [1], [0, 0, 1, 1], [], []>} : vector<2x32xbf16>, vector<32x32xbf16>, vector<2x32xf32> -> vector<2x32xf32>
    %293 = arith.addf %291, %292 : vector<2x32xf32>
    %cst_58 = arith.constant 5.000000e-01 : f32
    %294 = vector.broadcast %cst_58 : f32 to vector<2x32xf32>
    %295 = arith.mulf %294, %284 : vector<2x32xf32>
    %296 = math.tanh %295 : vector<2x32xf32>
    %cst_59 = arith.constant 5.000000e-01 : f32
    %297 = vector.broadcast %cst_59 : f32 to vector<2x32xf32>
    %298 = arith.mulf %297, %296 : vector<2x32xf32>
    %cst_60 = arith.constant 5.000000e-01 : f32
    %299 = vector.broadcast %cst_60 : f32 to vector<2x32xf32>
    %300 = arith.addf %298, %299 : vector<2x32xf32>
    %cst_61 = arith.constant 5.000000e-01 : f32
    %301 = vector.broadcast %cst_61 : f32 to vector<2x32xf32>
    %302 = arith.mulf %301, %287 : vector<2x32xf32>
    %303 = math.tanh %302 : vector<2x32xf32>
    %cst_62 = arith.constant 5.000000e-01 : f32
    %304 = vector.broadcast %cst_62 : f32 to vector<2x32xf32>
    %305 = arith.mulf %304, %303 : vector<2x32xf32>
    %cst_63 = arith.constant 5.000000e-01 : f32
    %306 = vector.broadcast %cst_63 : f32 to vector<2x32xf32>
    %307 = arith.addf %305, %306 : vector<2x32xf32>
    %308 = math.tanh %290 : vector<2x32xf32>
    %cst_64 = arith.constant 5.000000e-01 : f32
    %309 = vector.broadcast %cst_64 : f32 to vector<2x32xf32>
    %310 = arith.mulf %309, %293 : vector<2x32xf32>
    %311 = math.tanh %310 : vector<2x32xf32>
    %cst_65 = arith.constant 5.000000e-01 : f32
    %312 = vector.broadcast %cst_65 : f32 to vector<2x32xf32>
    %313 = arith.mulf %312, %311 : vector<2x32xf32>
    %cst_66 = arith.constant 5.000000e-01 : f32
    %314 = vector.broadcast %cst_66 : f32 to vector<2x32xf32>
    %315 = arith.addf %313, %314 : vector<2x32xf32>
    %316 = arith.mulf %307, %278 : vector<2x32xf32>
    %317 = arith.mulf %300, %308 : vector<2x32xf32>
    %318 = arith.addf %316, %317 : vector<2x32xf32>
    %319 = math.tanh %318 : vector<2x32xf32>
    %320 = arith.mulf %315, %319 : vector<2x32xf32>
    %321 = arith.truncf %320 : vector<2x32xf32> to vector<2x32xbf16>
    %322 = vector.extract_strided_slice %98 {offsets = [0, 0], sizes = [2, 32], strides = [1, 1]} : vector<2x128xf32> to vector<2x32xf32>
    %cst_67 = arith.constant dense<0.000000e+00> : vector<2x32xf32>
    %323 = tpu.matmul %321, %2, %cst_67 {dimension_numbers = #tpu.dot_dimension_numbers<[1], [0], [0], [1], [0, 0, 1, 1], [], []>} : vector<2x32xbf16>, vector<32x32xbf16>, vector<2x32xf32> -> vector<2x32xf32>
    %324 = arith.addf %322, %323 : vector<2x32xf32>
    %325 = vector.extract_strided_slice %98 {offsets = [0, 32], sizes = [2, 32], strides = [1, 1]} : vector<2x128xf32> to vector<2x32xf32>
    %cst_68 = arith.constant dense<0.000000e+00> : vector<2x32xf32>
    %326 = tpu.matmul %321, %3, %cst_68 {dimension_numbers = #tpu.dot_dimension_numbers<[1], [0], [0], [1], [0, 0, 1, 1], [], []>} : vector<2x32xbf16>, vector<32x32xbf16>, vector<2x32xf32> -> vector<2x32xf32>
    %327 = arith.addf %325, %326 : vector<2x32xf32>
    %328 = vector.extract_strided_slice %98 {offsets = [0, 64], sizes = [2, 32], strides = [1, 1]} : vector<2x128xf32> to vector<2x32xf32>
    %cst_69 = arith.constant dense<0.000000e+00> : vector<2x32xf32>
    %329 = tpu.matmul %321, %4, %cst_69 {dimension_numbers = #tpu.dot_dimension_numbers<[1], [0], [0], [1], [0, 0, 1, 1], [], []>} : vector<2x32xbf16>, vector<32x32xbf16>, vector<2x32xf32> -> vector<2x32xf32>
    %330 = arith.addf %328, %329 : vector<2x32xf32>
    %331 = vector.extract_strided_slice %98 {offsets = [0, 96], sizes = [2, 32], strides = [1, 1]} : vector<2x128xf32> to vector<2x32xf32>
    %cst_70 = arith.constant dense<0.000000e+00> : vector<2x32xf32>
    %332 = tpu.matmul %321, %5, %cst_70 {dimension_numbers = #tpu.dot_dimension_numbers<[1], [0], [0], [1], [0, 0, 1, 1], [], []>} : vector<2x32xbf16>, vector<32x32xbf16>, vector<2x32xf32> -> vector<2x32xf32>
    %333 = arith.addf %331, %332 : vector<2x32xf32>
    %cst_71 = arith.constant 5.000000e-01 : f32
    %334 = vector.broadcast %cst_71 : f32 to vector<2x32xf32>
    %335 = arith.mulf %334, %324 : vector<2x32xf32>
    %336 = math.tanh %335 : vector<2x32xf32>
    %cst_72 = arith.constant 5.000000e-01 : f32
    %337 = vector.broadcast %cst_72 : f32 to vector<2x32xf32>
    %338 = arith.mulf %337, %336 : vector<2x32xf32>
    %cst_73 = arith.constant 5.000000e-01 : f32
    %339 = vector.broadcast %cst_73 : f32 to vector<2x32xf32>
    %340 = arith.addf %338, %339 : vector<2x32xf32>
    %cst_74 = arith.constant 5.000000e-01 : f32
    %341 = vector.broadcast %cst_74 : f32 to vector<2x32xf32>
    %342 = arith.mulf %341, %327 : vector<2x32xf32>
    %343 = math.tanh %342 : vector<2x32xf32>
    %cst_75 = arith.constant 5.000000e-01 : f32
    %344 = vector.broadcast %cst_75 : f32 to vector<2x32xf32>
    %345 = arith.mulf %344, %343 : vector<2x32xf32>
    %cst_76 = arith.constant 5.000000e-01 : f32
    %346 = vector.broadcast %cst_76 : f32 to vector<2x32xf32>
    %347 = arith.addf %345, %346 : vector<2x32xf32>
    %348 = math.tanh %330 : vector<2x32xf32>
    %cst_77 = arith.constant 5.000000e-01 : f32
    %349 = vector.broadcast %cst_77 : f32 to vector<2x32xf32>
    %350 = arith.mulf %349, %333 : vector<2x32xf32>
    %351 = math.tanh %350 : vector<2x32xf32>
    %cst_78 = arith.constant 5.000000e-01 : f32
    %352 = vector.broadcast %cst_78 : f32 to vector<2x32xf32>
    %353 = arith.mulf %352, %351 : vector<2x32xf32>
    %cst_79 = arith.constant 5.000000e-01 : f32
    %354 = vector.broadcast %cst_79 : f32 to vector<2x32xf32>
    %355 = arith.addf %353, %354 : vector<2x32xf32>
    %356 = arith.mulf %347, %318 : vector<2x32xf32>
    %357 = arith.mulf %340, %348 : vector<2x32xf32>
    %358 = arith.addf %356, %357 : vector<2x32xf32>
    %359 = math.tanh %358 : vector<2x32xf32>
    %360 = arith.mulf %355, %359 : vector<2x32xf32>
    %361 = arith.truncf %360 : vector<2x32xf32> to vector<2x32xbf16>
    %362 = vector.extract_strided_slice %113 {offsets = [0, 0], sizes = [2, 32], strides = [1, 1]} : vector<2x128xf32> to vector<2x32xf32>
    %cst_80 = arith.constant dense<0.000000e+00> : vector<2x32xf32>
    %363 = tpu.matmul %361, %2, %cst_80 {dimension_numbers = #tpu.dot_dimension_numbers<[1], [0], [0], [1], [0, 0, 1, 1], [], []>} : vector<2x32xbf16>, vector<32x32xbf16>, vector<2x32xf32> -> vector<2x32xf32>
    %364 = arith.addf %362, %363 : vector<2x32xf32>
    %365 = vector.extract_strided_slice %113 {offsets = [0, 32], sizes = [2, 32], strides = [1, 1]} : vector<2x128xf32> to vector<2x32xf32>
    %cst_81 = arith.constant dense<0.000000e+00> : vector<2x32xf32>
    %366 = tpu.matmul %361, %3, %cst_81 {dimension_numbers = #tpu.dot_dimension_numbers<[1], [0], [0], [1], [0, 0, 1, 1], [], []>} : vector<2x32xbf16>, vector<32x32xbf16>, vector<2x32xf32> -> vector<2x32xf32>
    %367 = arith.addf %365, %366 : vector<2x32xf32>
    %368 = vector.extract_strided_slice %113 {offsets = [0, 64], sizes = [2, 32], strides = [1, 1]} : vector<2x128xf32> to vector<2x32xf32>
    %cst_82 = arith.constant dense<0.000000e+00> : vector<2x32xf32>
    %369 = tpu.matmul %361, %4, %cst_82 {dimension_numbers = #tpu.dot_dimension_numbers<[1], [0], [0], [1], [0, 0, 1, 1], [], []>} : vector<2x32xbf16>, vector<32x32xbf16>, vector<2x32xf32> -> vector<2x32xf32>
    %370 = arith.addf %368, %369 : vector<2x32xf32>
    %371 = vector.extract_strided_slice %113 {offsets = [0, 96], sizes = [2, 32], strides = [1, 1]} : vector<2x128xf32> to vector<2x32xf32>
    %cst_83 = arith.constant dense<0.000000e+00> : vector<2x32xf32>
    %372 = tpu.matmul %361, %5, %cst_83 {dimension_numbers = #tpu.dot_dimension_numbers<[1], [0], [0], [1], [0, 0, 1, 1], [], []>} : vector<2x32xbf16>, vector<32x32xbf16>, vector<2x32xf32> -> vector<2x32xf32>
    %373 = arith.addf %371, %372 : vector<2x32xf32>
    %cst_84 = arith.constant 5.000000e-01 : f32
    %374 = vector.broadcast %cst_84 : f32 to vector<2x32xf32>
    %375 = arith.mulf %374, %364 : vector<2x32xf32>
    %376 = math.tanh %375 : vector<2x32xf32>
    %cst_85 = arith.constant 5.000000e-01 : f32
    %377 = vector.broadcast %cst_85 : f32 to vector<2x32xf32>
    %378 = arith.mulf %377, %376 : vector<2x32xf32>
    %cst_86 = arith.constant 5.000000e-01 : f32
    %379 = vector.broadcast %cst_86 : f32 to vector<2x32xf32>
    %380 = arith.addf %378, %379 : vector<2x32xf32>
    %cst_87 = arith.constant 5.000000e-01 : f32
    %381 = vector.broadcast %cst_87 : f32 to vector<2x32xf32>
    %382 = arith.mulf %381, %367 : vector<2x32xf32>
    %383 = math.tanh %382 : vector<2x32xf32>
    %cst_88 = arith.constant 5.000000e-01 : f32
    %384 = vector.broadcast %cst_88 : f32 to vector<2x32xf32>
    %385 = arith.mulf %384, %383 : vector<2x32xf32>
    %cst_89 = arith.constant 5.000000e-01 : f32
    %386 = vector.broadcast %cst_89 : f32 to vector<2x32xf32>
    %387 = arith.addf %385, %386 : vector<2x32xf32>
    %388 = math.tanh %370 : vector<2x32xf32>
    %cst_90 = arith.constant 5.000000e-01 : f32
    %389 = vector.broadcast %cst_90 : f32 to vector<2x32xf32>
    %390 = arith.mulf %389, %373 : vector<2x32xf32>
    %391 = math.tanh %390 : vector<2x32xf32>
    %cst_91 = arith.constant 5.000000e-01 : f32
    %392 = vector.broadcast %cst_91 : f32 to vector<2x32xf32>
    %393 = arith.mulf %392, %391 : vector<2x32xf32>
    %cst_92 = arith.constant 5.000000e-01 : f32
    %394 = vector.broadcast %cst_92 : f32 to vector<2x32xf32>
    %395 = arith.addf %393, %394 : vector<2x32xf32>
    %396 = arith.mulf %387, %358 : vector<2x32xf32>
    %397 = arith.mulf %380, %388 : vector<2x32xf32>
    %398 = arith.addf %396, %397 : vector<2x32xf32>
    %399 = math.tanh %398 : vector<2x32xf32>
    %400 = arith.mulf %395, %399 : vector<2x32xf32>
    %401 = arith.truncf %400 : vector<2x32xf32> to vector<2x32xbf16>
    %402 = vector.extract_strided_slice %128 {offsets = [0, 0], sizes = [2, 32], strides = [1, 1]} : vector<2x128xf32> to vector<2x32xf32>
    %cst_93 = arith.constant dense<0.000000e+00> : vector<2x32xf32>
    %403 = tpu.matmul %401, %2, %cst_93 {dimension_numbers = #tpu.dot_dimension_numbers<[1], [0], [0], [1], [0, 0, 1, 1], [], []>} : vector<2x32xbf16>, vector<32x32xbf16>, vector<2x32xf32> -> vector<2x32xf32>
    %404 = arith.addf %402, %403 : vector<2x32xf32>
    %405 = vector.extract_strided_slice %128 {offsets = [0, 32], sizes = [2, 32], strides = [1, 1]} : vector<2x128xf32> to vector<2x32xf32>
    %cst_94 = arith.constant dense<0.000000e+00> : vector<2x32xf32>
    %406 = tpu.matmul %401, %3, %cst_94 {dimension_numbers = #tpu.dot_dimension_numbers<[1], [0], [0], [1], [0, 0, 1, 1], [], []>} : vector<2x32xbf16>, vector<32x32xbf16>, vector<2x32xf32> -> vector<2x32xf32>
    %407 = arith.addf %405, %406 : vector<2x32xf32>
    %408 = vector.extract_strided_slice %128 {offsets = [0, 64], sizes = [2, 32], strides = [1, 1]} : vector<2x128xf32> to vector<2x32xf32>
    %cst_95 = arith.constant dense<0.000000e+00> : vector<2x32xf32>
    %409 = tpu.matmul %401, %4, %cst_95 {dimension_numbers = #tpu.dot_dimension_numbers<[1], [0], [0], [1], [0, 0, 1, 1], [], []>} : vector<2x32xbf16>, vector<32x32xbf16>, vector<2x32xf32> -> vector<2x32xf32>
    %410 = arith.addf %408, %409 : vector<2x32xf32>
    %411 = vector.extract_strided_slice %128 {offsets = [0, 96], sizes = [2, 32], strides = [1, 1]} : vector<2x128xf32> to vector<2x32xf32>
    %cst_96 = arith.constant dense<0.000000e+00> : vector<2x32xf32>
    %412 = tpu.matmul %401, %5, %cst_96 {dimension_numbers = #tpu.dot_dimension_numbers<[1], [0], [0], [1], [0, 0, 1, 1], [], []>} : vector<2x32xbf16>, vector<32x32xbf16>, vector<2x32xf32> -> vector<2x32xf32>
    %413 = arith.addf %411, %412 : vector<2x32xf32>
    %cst_97 = arith.constant 5.000000e-01 : f32
    %414 = vector.broadcast %cst_97 : f32 to vector<2x32xf32>
    %415 = arith.mulf %414, %404 : vector<2x32xf32>
    %416 = math.tanh %415 : vector<2x32xf32>
    %cst_98 = arith.constant 5.000000e-01 : f32
    %417 = vector.broadcast %cst_98 : f32 to vector<2x32xf32>
    %418 = arith.mulf %417, %416 : vector<2x32xf32>
    %cst_99 = arith.constant 5.000000e-01 : f32
    %419 = vector.broadcast %cst_99 : f32 to vector<2x32xf32>
    %420 = arith.addf %418, %419 : vector<2x32xf32>
    %cst_100 = arith.constant 5.000000e-01 : f32
    %421 = vector.broadcast %cst_100 : f32 to vector<2x32xf32>
    %422 = arith.mulf %421, %407 : vector<2x32xf32>
    %423 = math.tanh %422 : vector<2x32xf32>
    %cst_101 = arith.constant 5.000000e-01 : f32
    %424 = vector.broadcast %cst_101 : f32 to vector<2x32xf32>
    %425 = arith.mulf %424, %423 : vector<2x32xf32>
    %cst_102 = arith.constant 5.000000e-01 : f32
    %426 = vector.broadcast %cst_102 : f32 to vector<2x32xf32>
    %427 = arith.addf %425, %426 : vector<2x32xf32>
    %428 = math.tanh %410 : vector<2x32xf32>
    %cst_103 = arith.constant 5.000000e-01 : f32
    %429 = vector.broadcast %cst_103 : f32 to vector<2x32xf32>
    %430 = arith.mulf %429, %413 : vector<2x32xf32>
    %431 = math.tanh %430 : vector<2x32xf32>
    %cst_104 = arith.constant 5.000000e-01 : f32
    %432 = vector.broadcast %cst_104 : f32 to vector<2x32xf32>
    %433 = arith.mulf %432, %431 : vector<2x32xf32>
    %cst_105 = arith.constant 5.000000e-01 : f32
    %434 = vector.broadcast %cst_105 : f32 to vector<2x32xf32>
    %435 = arith.addf %433, %434 : vector<2x32xf32>
    %436 = arith.mulf %427, %398 : vector<2x32xf32>
    %437 = arith.mulf %420, %428 : vector<2x32xf32>
    %438 = arith.addf %436, %437 : vector<2x32xf32>
    %439 = math.tanh %438 : vector<2x32xf32>
    %440 = arith.mulf %435, %439 : vector<2x32xf32>
    %c48 = arith.constant 48 : index
    %c0_106 = arith.constant 0 : index
    %441 = vector.load %arg1[%c48, %c0_106] : memref<88x128xf32, #tpu.memory_space<vmem>>, vector<32x2xf32>
    %c80 = arith.constant 80 : index
    %c0_107 = arith.constant 0 : index
    %442 = vector.load %arg1[%c80, %c0_107] : memref<88x128xf32, #tpu.memory_space<vmem>>, vector<1x2xf32>
    %cst_108 = arith.constant dense<0.000000e+00> : vector<2x2xf32>
    %443 = tpu.matmul %440, %441, %cst_108 {dimension_numbers = #tpu.dot_dimension_numbers<[1], [0], [0], [1], [0, 0, 1, 1], [], []>} : vector<2x32xf32>, vector<32x2xf32>, vector<2x2xf32> -> vector<2x2xf32>
    %444 = vector.broadcast %442 : vector<1x2xf32> to vector<2x2xf32>
    %445 = arith.addf %443, %444 : vector<2x2xf32>
    %c0_109 = arith.constant 0 : index
    %c0_110 = arith.constant 0 : index
    %446 = vector.load %arg2[%c0_109, %c0_110] : memref<2x2xf32, #tpu.memory_space<vmem>>, vector<2x2xf32>
    tpu.vector_store %arg2[%c0_109, %c0_110], %445 {strides = array<i32>} : memref<2x2xf32, #tpu.memory_space<vmem>>, vector<2x2xf32>,
    return
  }
}

</mosaic_0001>

<bundles_post_ra>
// kernel: tpu_custom_call.1
= control target key start
LH: loop header
LB: loop body
LE: loop exit
PB: predicated region body
PF: predicated region fallthrough
CT: control target
= control target key end

     0   :  { %7 = vsyncpa [#allocation3], 0  ;;  %s3268_s0 = inlined_call_operand.vmem [shape: f32[2,8,2], index: 0, kind: input, shape index: {}]   ;;  %s3269_s1 = inlined_call_operand.hbm [shape: f32[88,128], index: 1, kind: input, shape index: {}]   ;;  %s3270_s2 = inlined_call_operand.hbm [shape: f32[2,2], index: 2, kind: output, shape index: {}]  }
   0x1   :  { %8 = vsyncpa [#allocation4], 0  ;;  %s2773_s9 = smov [#allocation2]  }
   0x2   :  { %s16_s10 = sshll.u32 %s2773_s9, 4  ;;  %s17_s10 = int_to_ptr.vmem [resolvable:$true] %s16_s10 }
   0x3   :  { %s2737_s11 = scalar_lea.vmem %s17_s10, 1408  ;;  %p2742_p1 = scmp.lt.s32.totalorder %s17_s10, %s17_s10 }
   0x4   :  { %p2738_p0 = scmp.ne.s32.totalorder %s17_s10, %s2737_s11  ;;  %p2743_p2 = scmp.lt.s32.totalorder %s2737_s11, %s2737_s11 }
   0x6   :  { %p2744_p3 = por %p2743_p2, %p2742_p1 }
   0x8   :  { %p2745_p4 = pnand %p2744_p3, %p2738_p0 }
   0xa   :  { %2748 = shalt.err (!%p2745_p4)
}
   0xb   :  { %s2774_s12 = smov 128   ;;  %s2775_s13 = smov 8  }
   0xc   :  { %22 = dma.hbm_to_vmem [thread:$0]  %s3269_s1, 1408, %s17_s10, [#allocation3], %s2774_s12, %s2774_s12, %s2775_s13  }
   0xd   :  { %2769 = dma.done.wait [#allocation3], 1408  }
   0xe   :  { %2770 = vsyncadd [#allocation3], 4294965888  ;;  %v2776_v0 = vmov 0   ;;  %v36_v1 = vld [vmem:[%s3268_s0 + $0x8] sm:$0xff]  ;;  %v35_v2 = vld [vmem:[%s3268_s0] sm:$0xff]  ;;  %v2777_v3 = vmov 1   ;;  %v47_v4 = vlaneseq }
   0xf   :  { %2575 = vset.pattern.permute.xlu1 %v2776_v0  ;;  %2573 = vset.pattern.permute.xlu0 %v2776_v0  ;;  %v33_v8 = vld [vmem:[#allocation2 + $0x20] sm:$0x3]  ;;  %v2207_v19 = vld [vmem:[#allocation2 + $0x28] ss:$0 sm:$0xff]  ;;  %s2778_s0 = smov 64   ;;  %s2779_s1 = smov 32  }
  0x10   :  { %44 = vperm.xlu0 %2573, %v36_v1   ;;  %39 = vperm.xlu1 %2575, %v35_v2   ;;  %v48_v5 = vshrl.u32 %v47_v4, 7  ;;  %v29_v44 = vld [vmem:[#allocation2 + $0x10] sm:$0xff]  ;;  %v30_v45 = vld [vmem:[#allocation2 + $0x18] sm:$0xff]  ;;  %s2780_s20 = smov 96   ;;  %v27_v49 = vld [vmem:[#allocation2] sm:$0xff]  ;;  %v2781_v51 = vmov 0.0  }
  0x11   :  { %v2828_v48 = vpack.c.bf16 %v30_v45, %v29_v44  ;;  %v28_v50 = vld [vmem:[#allocation2 + $0x8] sm:$0xff]  ;;  %2327 = vmatprep.subr.bf16.mxu0 %v2781_v51  ;;  %vm2782_vm0 = vmmov 0   ;;  %2335 = vmatprep.subr.bf16.mxu1 %v2781_v51  ;;  %vm126_vm1 = vcmask 1041409   ;;  %vm131_vm2 = vcmask 261120   ;;  %s2783_s21 = smov [#allocation5]  }
  0x12   :  { %v49_v6 = vsub.s32 0, %v48_v5  ;;  %v63_v7 = vsub.s32 1, %v48_v5  ;;  %2331 = vmatprep.mubr.msk.bf16.mxu0 %vm2782_vm0, %v2781_v51  ;;  %v2842_v52 = vpack.c.bf16 %v28_v50, %v27_v49  ;;  %2339 = vmatprep.mubr.msk.bf16.mxu1 %vm2782_vm0, %v2781_v51  ;;  %s2198_s22 = sshll.u32 %s2783_s21, 4  ;;  %vm2190_vm3 = vcmask 9216   ;;  %s2199_s22 = int_to_ptr.vmem [resolvable:$true] %s2198_s22 }
  0x13   :  { %2328 = vmatpush3.bf16.msra.mxu0 %v2828_v48  ;;  %s2749_s23 = scalar_lea.vmem %s2199_s22, 32  ;;  %p2754_p6 = scmp.lt.s32.totalorder %s2199_s22, %s2199_s22 }
  0x14   :  { %2574 = vset.pattern.permute.xlu0 %v2777_v3  ;;  %2576 = vset.pattern.permute.xlu1 %v2777_v3  ;;  %v50_v11 = vrot.slane %v33_v8, %v49_v6  ;;  %v64_v12 = vrot.slane %v33_v8, %v63_v7  ;;  %p2750_p5 = scmp.ne.s32.totalorder %s2199_s22, %s2749_s23  ;;  %p2755_p7 = scmp.lt.s32.totalorder %s2749_s23, %s2749_s23 }
  0x15   :  { %58 = vperm.xlu0 %2574, %v36_v1   ;;  %54 = vperm.xlu1 %2576, %v35_v2  }
  0x16   :  { %2329 = vmatprep.subr.bf16.mxu0 %v2781_v51  ;;  %p2756_p8 = por %p2755_p7, %p2754_p6 }
  0x17   :  { %2330 = vmatpush3.bf16.msra.mxu0 %v2842_v52 }
  0x18   :  { %2343 = vmatprep.subr.bf16.mxu0 %v2781_v51  ;;  %p2757_p9 = pnand %p2756_p8, %p2750_p5 }
  0x8b   :  { %v45_v9 = vpop.permute.xlu0 %44  ;;  %v40_v10 = vpop.permute.xlu1 %39 }
  0x8c   :  { %v52_v15 = vmul.f32 %v50_v11, %v45_v9  ;;  %v51_v16 = vmul.f32 %v50_v11, %v40_v10 }
  0x90   :  { %v59_v13 = vpop.permute.xlu0 %58  ;;  %v55_v14 = vpop.permute.xlu1 %54 }
  0x91   :  { %v66_v17 = vmul.f32 %v64_v12, %v59_v13  ;;  %v65_v18 = vmul.f32 %v64_v12, %v55_v14 }
  0x93   :  { %v68_v20 = vadd.f32 %v66_v17, %v52_v15  ;;  %v67_v21 = vadd.f32 %v65_v18, %v51_v16 }
  0x95   :  { %v2808_v22 = vadd.f32 %v2207_v19, %v68_v20  ;;  %v2810_v23 = vadd.f32 %v2207_v19, %v67_v21 }
  0x97   :  { %2577 = vtanh.f32 %v2808_v22  ;;  %v76_v26 = vmul.f32 0.5, %v2808_v22  ;;  %v75_v27 = vmul.f32 0.5, %v2810_v23 }
  0x98   :  { %2579 = vtanh.f32 %v2810_v23 }
  0x99   :  { %2581 = vtanh.f32 %v76_v26 }
  0x9a   :  { %2583 = vtanh.f32 %v75_v27 }
  0xa4   :  { %v2578_v24 = vpop.eup %2577 }
  0xa5   :  { %v2580_v25 = vpop.eup %2579  ;;  %91 = vrot.lane.b32.xlu1 %v2578_v24, %s2778_s0 }
  0xa6   :  { %89 = vrot.lane.b32.xlu0 %v2580_v25, %s2778_s0  ;;  %v2582_v28 = vpop.eup %2581 }
  0xa7   :  { %v2584_v29 = vpop.eup %2583  ;;  %v80_v30 = vmul.f32 0.5, %v2582_v28 }
  0xa8   :  { %v79_v31 = vmul.f32 0.5, %v2584_v29 }
  0xa9   :  { %v82_v32 = vadd.f32 0.5, %v80_v30 }
  0xaa   :  { %v81_v34 = vadd.f32 0.5, %v79_v31 }
  0xab   :  { %v86_v38 = vmul.f32 0.0, %v82_v32 }
  0xac   :  { %v85_v40 = vmul.f32 0.0, %v81_v34 }
 0x117   :  { %v92_v33 = vpop.permute.xlu1 %91 }
 0x118   :  { %v96_v35 = vmul.f32 %v92_v33, %v82_v32  ;;  %v90_v36 = vpop.permute.xlu0 %89 }
 0x119   :  { %v95_v37 = vmul.f32 %v90_v36, %v81_v34 }
 0x11a   :  { %101 = vrot.lane.b32.xlu1 %v96_v35, %s2779_s1 }
 0x11b   :  { %99 = vrot.lane.b32.xlu0 %v95_v37, %s2779_s1 }
 0x18c   :  { %v102_v39 = vpop.permute.xlu1 %101 }
 0x18d   :  { %v2820_v41 = vadd.f32 %v102_v39, %v86_v38  ;;  %v100_v42 = vpop.permute.xlu0 %99 }
 0x18e   :  { %v2822_v43 = vadd.f32 %v100_v42, %v85_v40 }
 0x18f   :  { %2585 = vtanh.f32 %v2820_v41 }
 0x190   :  { %2587 = vtanh.f32 %v2822_v43 }
 0x19c   :  { %v2586_v46 = vpop.eup %2585 }
 0x19d   :  { %v2588_v47 = vpop.eup %2587  ;;  %113 = vrot.lane.b32.xlu1 %v2586_v46, %s2778_s0 }
 0x19e   :  { %111 = vrot.lane.b32.xlu0 %v2588_v47, %s2778_s0 }
 0x1a2   :  { %241 = vrot.lane.b32.xlu0 %v2828_v48, %s2778_s0 }
 0x1a6   :  { %185 = vrot.lane.b32.xlu0 %v2828_v48, %s2780_s20 }
 0x1aa   :  { %297 = vrot.lane.b32.xlu0 %v2828_v48, %s2779_s1 }
 0x20f   :  { %v114_v53 = vpop.permute.xlu1 %113 }
 0x210   :  { %v118_v54 = vmul.f32 %v114_v53, %v82_v32  ;;  %v112_v55 = vpop.permute.xlu0 %111 }
 0x211   :  { %v117_v56 = vmul.f32 %v112_v55, %v81_v34 }
 0x212   :  { %v120_v57 = vpack.c.bf16 %v118_v54, %v118_v54 }
 0x213   :  { %v119_v58 = vpack.c.bf16 %v117_v56, %v117_v56 }
 0x214   :  { %v124_v59 = vunpack.c.l.b16 %v120_v57  ;;  %v2848_v60 = vpop.permute.xlu0 %241 }
 0x215   :  { %v123_v62 = vunpack.c.l.b16 %v119_v58 }
 0x216   :  { %v125_v61 = vrot.slane %v124_v59, 7 }
 0x218   :  { %v127_v63 = vsel %vm126_vm1, %v125_v61, %v123_v62  ;;  %v2851_v0 = vpop.permute.xlu0 %185 }
 0x219   :  { %v128_v1 = vpack.c.b16 %v127_v63, %v127_v63  ;;  %2336 = vmatpush3.bf16.msra.mxu1 %v2851_v0 }
 0x21a   :  { %2337 = vmatprep.subr.bf16.mxu1 %v2781_v51 }
 0x21b   :  { %129 = vrot.lane.b32.xlu1 %v128_v1, %s2779_s1 }
 0x21c   :  { %v2875_v5 = vpop.permute.xlu0 %297 }
 0x21f   :  { %239 = vrot.lane.b32.xlu1 %v2842_v52, %s2778_s0 }
 0x223   :  { %183 = vrot.lane.b32.xlu1 %v2842_v52, %s2780_s20 }
 0x227   :  { %295 = vrot.lane.b32.xlu1 %v2842_v52, %s2779_s1 }
 0x28d   :  { %v130_v2 = vpop.permute.xlu1 %129 }
 0x28e   :  { %2332 = vmatmul.mubr.msk.bf16.vlgmr.msra.gmra.mxu0 %vm131_vm2, %v130_v2 }
 0x28f   :  { %2344 = vmatpush3.bf16.msra.mxu0 %v2848_v60  ;;  %2347 = vmatprep.mubr.msk.bf16.mxu0 %vm2782_vm0, %v2781_v51 }
 0x290   :  { %2345 = vmatprep.subr.bf16.mxu0 %v2781_v51 }
 0x291   :  { %v2867_v3 = vpop.permute.xlu1 %239 }
 0x293   :  { %2346 = vmatpush3.bf16.msra.mxu0 %v2867_v3 }
 0x294   :  { %2359 = vmatprep.subr.bf16.mxu0 %v2781_v51 }
 0x295   :  { %v2871_v4 = vpop.permute.xlu1 %183 }
 0x296   :  { %2338 = vmatpush3.bf16.msra.mxu1 %v2871_v4  ;;  %2348 = vmatmul.mubr.msk.bf16.vlgmr.msra.gmra.mxu0 %vm131_vm2, %v130_v2 }
 0x297   :  { %2351 = vmatprep.subr.bf16.mxu1 %v2781_v51  ;;  %2360 = vmatpush3.bf16.msra.mxu0 %v2828_v48 }
 0x298   :  { %2361 = vmatprep.subr.bf16.mxu0 %v2781_v51  ;;  %2363 = vmatprep.mubr.msk.bf16.mxu0 %vm2782_vm0, %v2781_v51 }
 0x299   :  { %2340 = vmatmul.mubr.msk.bf16.vlgmr.msra.gmra.mxu1 %vm131_vm2, %v130_v2  ;;  %v2887_v6 = vpop.permute.xlu1 %295 }
 0x29a   :  { %2352 = vmatpush3.bf16.msra.mxu1 %v2875_v5  ;;  %2355 = vmatprep.mubr.msk.bf16.mxu1 %vm2782_vm0, %v2781_v51 }
 0x29b   :  { %2353 = vmatprep.subr.bf16.mxu1 %v2781_v51  ;;  %2362 = vmatpush3.bf16.msra.mxu0 %v2842_v52 }
 0x29c   :  { %2375 = vmatprep.subr.bf16.mxu0 %v2781_v51 }
 0x29e   :  { %2354 = vmatpush3.bf16.msra.mxu1 %v2887_v6 }
 0x29f   :  { %2367 = vmatprep.subr.bf16.mxu1 %v2781_v51 }
 0x2a1   :  { %2356 = vmatmul.mubr.msk.bf16.vlgmr.msra.gmra.mxu1 %vm131_vm2, %v130_v2 }
 0x2a2   :  { %2368 = vmatpush3.bf16.msra.mxu1 %v2851_v0  ;;  %2371 = vmatprep.mubr.msk.bf16.mxu1 %vm2782_vm0, %v2781_v51 }
 0x2a3   :  { %2369 = vmatprep.subr.bf16.mxu1 %v2781_v51 }
 0x2a6   :  { %2370 = vmatpush3.bf16.msra.mxu1 %v2871_v4 }
 0x2a7   :  { %2383 = vmatprep.subr.bf16.mxu1 %v2781_v51 }
 0x34e   :  { %v169_v7 = vpop.f32.mrf.mxu0 }
 0x34f   :  { %v176_v33 = vrot.slane %v169_v7, 7  ;;  %v180_v34 = vadd.f32 %v169_v7, %v2808_v22  ;;  %v380_v7 = vrot.slane %v2820_v41, 7 }
 0x350   :  { %v2333_v8 = vpop.f32.mrf.mxu0 }
 0x351   :  { %v179_v35 = vadd.f32 %v176_v33, %v2810_v23  ;;  %v352_v36 = vmul.f32 0.5, %v180_v34 }
 0x352   :  { %v172_v9 = vpop.f32.mrf.mxu0 }
 0x353   :  { %v351_v37 = vmul.f32 0.5, %v179_v35  ;;  %v379_v9 = vrot.slane %v2822_v43, 7 }
 0x354   :  { %v2334_v10 = vpop.f32.mrf.mxu0 }
 0x356   :  { %v279_v11 = vpop.f32.mrf.mxu0 }
 0x357   :  { %v286_v12 = vrot.slane %v279_v11, 7  ;;  %289 = vrot.lane.b32.xlu1 %v279_v11, %s2778_s0 }
 0x358   :  { %v2349_v13 = vpop.f32.mrf.mxu0 }
 0x359   :  { %v223_v14 = vpop.f32.mrf.mxu1  ;;  %287 = vrot.lane.b32.xlu0 %v286_v12, %s2778_s0 }
 0x35a   :  { %v282_v15 = vpop.f32.mrf.mxu0  ;;  %v230_v32 = vrot.slane %v223_v14, 7 }
 0x35b   :  { %v2341_v16 = vpop.f32.mrf.mxu1 }
 0x35c   :  { %v2350_v17 = vpop.f32.mrf.mxu0 }
 0x35d   :  { %v226_v18 = vpop.f32.mrf.mxu1 }
 0x35f   :  { %v2342_v19 = vpop.f32.mrf.mxu1 }
 0x361   :  { %v335_v20 = vpop.f32.mrf.mxu1 }
 0x362   :  { %v342_v53 = vrot.slane %v335_v20, 7 }
 0x363   :  { %v2357_v21 = vpop.f32.mrf.mxu1 }
 0x365   :  { %v338_v24 = vpop.f32.mrf.mxu1 }
 0x367   :  { %v2358_v25 = vpop.f32.mrf.mxu1 }
 0x3c9   :  { %v290_v26 = vpop.permute.xlu1 %289 }
 0x3ca   :  { %v294_v27 = vadd.f32 %v290_v26, %v2808_v22 }
 0x3cb   :  { %v288_v28 = vpop.permute.xlu0 %287 }
 0x3cc   :  { %2589 = vtanh.f32 %v294_v27  ;;  %v293_v29 = vadd.f32 %v288_v28, %v2810_v23 }
 0x3ce   :  { %2591 = vtanh.f32 %v293_v29 }
 0x3cf   :  { %2593 = vtanh.f32 %v352_v36 }
 0x3d0   :  { %2595 = vtanh.f32 %v351_v37 }
 0x3d9   :  { %v2590_v30 = vpop.eup %2589 }
 0x3da   :  { %389 = vrot.lane.b32.xlu1 %v2590_v30, %s2778_s0 }
 0x3db   :  { %v2592_v31 = vpop.eup %2591 }
 0x3dc   :  { %387 = vrot.lane.b32.xlu0 %v2592_v31, %s2778_s0  ;;  %v2594_v38 = vpop.eup %2593 }
 0x3dd   :  { %v2596_v39 = vpop.eup %2595  ;;  %v356_v40 = vmul.f32 0.5, %v2594_v38 }
 0x3de   :  { %233 = vrot.lane.b32.xlu1 %v223_v14, %s2779_s1  ;;  %v355_v42 = vmul.f32 0.5, %v2596_v39 }
 0x3df   :  { %v358_v44 = vadd.f32 0.5, %v356_v40 }
 0x3e0   :  { %231 = vrot.lane.b32.xlu0 %v230_v32, %s2779_s1  ;;  %v357_v47 = vadd.f32 0.5, %v355_v42 }
 0x44c   :  { %v390_v45 = vpop.permute.xlu1 %389 }
 0x44d   :  { %v394_v46 = vmul.f32 %v390_v45, %v358_v44 }
 0x44e   :  { %v388_v49 = vpop.permute.xlu0 %387 }
 0x44f   :  { %v393_v50 = vmul.f32 %v388_v49, %v357_v47  ;;  %399 = vrot.lane.b32.xlu1 %v394_v46, %s2779_s1 }
 0x450   :  { %v234_v54 = vpop.permute.xlu1 %233 }
 0x451   :  { %397 = vrot.lane.b32.xlu0 %v393_v50, %s2779_s1  ;;  %v238_v56 = vadd.f32 %v234_v54, %v2808_v22 }
 0x452   :  { %v232_v55 = vpop.permute.xlu0 %231 }
 0x453   :  { %345 = vrot.lane.b32.xlu1 %v335_v20, %s2780_s20  ;;  %v237_v57 = vadd.f32 %v232_v55, %v2810_v23  ;;  %v360_v58 = vmul.f32 0.5, %v238_v56 }
 0x455   :  { %343 = vrot.lane.b32.xlu0 %v342_v53, %s2780_s20  ;;  %v359_v59 = vmul.f32 0.5, %v237_v57  ;;  %2597 = vtanh.f32 %v360_v58 }
 0x457   :  { %2599 = vtanh.f32 %v359_v59 }
 0x462   :  { %v2598_v61 = vpop.eup %2597 }
 0x463   :  { %v364_v63 = vmul.f32 0.5, %v2598_v61 }
 0x464   :  { %v2600_v62 = vpop.eup %2599 }
 0x465   :  { %v363_v1 = vmul.f32 0.5, %v2600_v62  ;;  %v366_v2 = vadd.f32 0.5, %v364_v63 }
 0x467   :  { %v365_v8 = vadd.f32 0.5, %v363_v1  ;;  %v384_v10 = vmul.f32 %v380_v7, %v366_v2 }
 0x469   :  { %v383_v13 = vmul.f32 %v379_v9, %v365_v8 }
 0x4c1   :  { %v400_v11 = vpop.permute.xlu1 %399 }
 0x4c2   :  { %v2918_v12 = vadd.f32 %v400_v11, %v384_v10 }
 0x4c3   :  { %v398_v14 = vpop.permute.xlu0 %397 }
 0x4c4   :  { %2601 = vtanh.f32 %v2918_v12  ;;  %v2921_v15 = vadd.f32 %v398_v14, %v383_v13 }
 0x4c5   :  { %v346_v41 = vpop.permute.xlu1 %345 }
 0x4c6   :  { %2603 = vtanh.f32 %v2921_v15  ;;  %v350_v18 = vadd.f32 %v346_v41, %v2808_v22 }
 0x4c7   :  { %v344_v43 = vpop.permute.xlu0 %343 }
 0x4c8   :  { %v349_v19 = vadd.f32 %v344_v43, %v2810_v23  ;;  %v370_v20 = vmul.f32 0.5, %v350_v18 }
 0x4ca   :  { %v369_v21 = vmul.f32 0.5, %v349_v19  ;;  %2605 = vtanh.f32 %v370_v20 }
 0x4cc   :  { %2607 = vtanh.f32 %v369_v21 }
 0x4d1   :  { %v2602_v16 = vpop.eup %2601 }
 0x4d2   :  { %411 = vrot.lane.b32.xlu1 %v2602_v16, %s2778_s0 }
 0x4d3   :  { %v2604_v17 = vpop.eup %2603 }
 0x4d4   :  { %409 = vrot.lane.b32.xlu0 %v2604_v17, %s2778_s0 }
 0x4d7   :  { %v2606_v24 = vpop.eup %2605 }
 0x4d8   :  { %v374_v26 = vmul.f32 0.5, %v2606_v24 }
 0x4d9   :  { %v2608_v25 = vpop.eup %2607 }
 0x4da   :  { %v373_v27 = vmul.f32 0.5, %v2608_v25  ;;  %v376_v28 = vadd.f32 0.5, %v374_v26 }
 0x4dc   :  { %v375_v31 = vadd.f32 0.5, %v373_v27 }
 0x544   :  { %v412_v29 = vpop.permute.xlu1 %411 }
 0x545   :  { %v416_v30 = vmul.f32 %v412_v29, %v376_v28 }
 0x546   :  { %v410_v32 = vpop.permute.xlu0 %409 }
 0x547   :  { %v415_v33 = vmul.f32 %v410_v32, %v375_v31  ;;  %v418_v34 = vpack.c.bf16 %v416_v30, %v416_v30 }
 0x549   :  { %v417_v35 = vpack.c.bf16 %v415_v33, %v415_v33  ;;  %v422_v37 = vunpack.c.l.b16 %v418_v34 }
 0x54b   :  { %v421_v36 = vunpack.c.l.b16 %v417_v35 }
 0x54d   :  { %v423_v38 = vrot.slane %v421_v36, 1 }
 0x54f   :  { %v424_v39 = vsel %vm126_vm1, %v422_v37, %v423_v38 }
 0x550   :  { %v425_v40 = vpack.c.b16 %v424_v39, %v424_v39 }
 0x552   :  { %426 = vrot.lane.b32.xlu0 %v425_v40, %s2779_s1 }
 0x5c4   :  { %v427_v42 = vpop.permute.xlu0 %426 }
 0x5c5   :  { %2364 = vmatmul.mubr.msk.bf16.vlgmr.msra.gmra.mxu0 %vm131_vm2, %v427_v42  ;;  %2372 = vmatmul.mubr.msk.bf16.vlgmr.msra.gmra.mxu1 %vm131_vm2, %v427_v42 }
 0x5c6   :  { %2376 = vmatpush3.bf16.msra.mxu0 %v2848_v60  ;;  %2384 = vmatpush3.bf16.msra.mxu1 %v2875_v5 }
 0x5c7   :  { %2377 = vmatprep.subr.bf16.mxu0 %v2781_v51  ;;  %2385 = vmatprep.subr.bf16.mxu1 %v2781_v51 }
 0x5c8   :  { %2379 = vmatprep.mubr.msk.bf16.mxu0 %vm2782_vm0, %v2781_v51  ;;  %2387 = vmatprep.mubr.msk.bf16.mxu1 %vm2782_vm0, %v2781_v51 }
 0x5ca   :  { %2378 = vmatpush3.bf16.msra.mxu0 %v2867_v3  ;;  %2386 = vmatpush3.bf16.msra.mxu1 %v2887_v6 }
 0x5cb   :  { %2399 = vmatprep.subr.bf16.mxu1 %v2781_v51  ;;  %2391 = vmatprep.subr.bf16.mxu0 %v2781_v51 }
 0x5cd   :  { %2380 = vmatmul.mubr.msk.bf16.vlgmr.msra.gmra.mxu0 %vm131_vm2, %v427_v42  ;;  %2388 = vmatmul.mubr.msk.bf16.vlgmr.msra.gmra.mxu1 %vm131_vm2, %v427_v42 }
 0x5ce   :  { %2400 = vmatpush3.bf16.msra.mxu1 %v2851_v0  ;;  %2392 = vmatpush3.bf16.msra.mxu0 %v2828_v48 }
 0x5cf   :  { %2401 = vmatprep.subr.bf16.mxu1 %v2781_v51  ;;  %2393 = vmatprep.subr.bf16.mxu0 %v2781_v51 }
 0x5d0   :  { %2395 = vmatprep.mubr.msk.bf16.mxu0 %vm2782_vm0, %v2781_v51  ;;  %2403 = vmatprep.mubr.msk.bf16.mxu1 %vm2782_vm0, %v2781_v51 }
 0x5d2   :  { %2402 = vmatpush3.bf16.msra.mxu1 %v2871_v4  ;;  %2394 = vmatpush3.bf16.msra.mxu0 %v2842_v52 }
 0x5d3   :  { %2407 = vmatprep.subr.bf16.mxu0 %v2781_v51  ;;  %2415 = vmatprep.subr.bf16.mxu1 %v2781_v51 }
 0x685   :  { %v465_v44 = vpop.f32.mrf.mxu0  ;;  %v512_v45 = vpop.f32.mrf.mxu1 }
 0x686   :  { %v520_v14 = vrot.slane %v512_v45, 7  ;;  %v519_v16 = vrot.slane %v512_v45, 6  ;;  %v473_v17 = vrot.slane %v465_v44, 7  ;;  %v472_v41 = vrot.slane %v465_v44, 6 }
 0x687   :  { %v2365_v46 = vpop.f32.mrf.mxu0  ;;  %v2373_v47 = vpop.f32.mrf.mxu1 }
 0x688   :  { %v477_v43 = vadd.f32 %v473_v17, %v2808_v22  ;;  %v476_v18 = vadd.f32 %v472_v41, %v2810_v23 }
 0x689   :  { %v468_v49 = vpop.f32.mrf.mxu0  ;;  %v515_v50 = vpop.f32.mrf.mxu1 }
 0x68a   :  { %v632_v19 = vmul.f32 0.5, %v477_v43  ;;  %v631_v20 = vmul.f32 0.5, %v476_v18  ;;  %v660_v50 = vrot.slane %v2918_v12, 7 }
 0x68b   :  { %v2366_v53 = vpop.f32.mrf.mxu0  ;;  %v2374_v54 = vpop.f32.mrf.mxu1 }
 0x68c   :  { %v659_v53 = vrot.slane %v2921_v15, 7 }
 0x68d   :  { %v563_v55 = vpop.f32.mrf.mxu0  ;;  %v614_v56 = vpop.f32.mrf.mxu1 }
 0x68e   :  { %v570_v57 = vrot.slane %v563_v55, 6  ;;  %v571_v58 = vrot.slane %v563_v55, 7  ;;  %v622_v33 = vrot.slane %v614_v56, 7  ;;  %v621_v34 = vrot.slane %v614_v56, 6 }
 0x68f   :  { %v2381_v59 = vpop.f32.mrf.mxu0  ;;  %v2389_v61 = vpop.f32.mrf.mxu1 }
 0x690   :  { %574 = vrot.lane.b32.xlu0 %v571_v58, %s2778_s0  ;;  %572 = vrot.lane.b32.xlu1 %v570_v57, %s2778_s0 }
 0x691   :  { %v566_v62 = vpop.f32.mrf.mxu0  ;;  %v617_v63 = vpop.f32.mrf.mxu1 }
 0x693   :  { %v2382_v1 = vpop.f32.mrf.mxu0  ;;  %v2390_v2 = vpop.f32.mrf.mxu1 }
 0x702   :  { %v575_v7 = vpop.permute.xlu0 %574  ;;  %v573_v8 = vpop.permute.xlu1 %572 }
 0x703   :  { %v579_v9 = vadd.f32 %v575_v7, %v2808_v22  ;;  %v578_v10 = vadd.f32 %v573_v8, %v2810_v23 }
 0x705   :  { %2609 = vtanh.f32 %v579_v9 }
 0x706   :  { %2611 = vtanh.f32 %v578_v10 }
 0x707   :  { %2613 = vtanh.f32 %v632_v19 }
 0x708   :  { %2615 = vtanh.f32 %v631_v20 }
 0x712   :  { %v2610_v11 = vpop.eup %2609 }
 0x713   :  { %v2612_v13 = vpop.eup %2611  ;;  %669 = vrot.lane.b32.xlu0 %v2610_v11, %s2778_s0 }
 0x714   :  { %667 = vrot.lane.b32.xlu1 %v2612_v13, %s2778_s0  ;;  %v2614_v21 = vpop.eup %2613 }
 0x715   :  { %v2616_v24 = vpop.eup %2615  ;;  %v636_v25 = vmul.f32 0.5, %v2614_v21 }
 0x716   :  { %v635_v26 = vmul.f32 0.5, %v2616_v24 }
 0x717   :  { %523 = vrot.lane.b32.xlu0 %v520_v14, %s2779_s1  ;;  %v638_v27 = vadd.f32 0.5, %v636_v25 }
 0x718   :  { %521 = vrot.lane.b32.xlu1 %v519_v16, %s2779_s1  ;;  %v637_v29 = vadd.f32 0.5, %v635_v26 }
 0x785   :  { %v670_v28 = vpop.permute.xlu0 %669 }
 0x786   :  { %v674_v30 = vmul.f32 %v670_v28, %v638_v27  ;;  %v668_v31 = vpop.permute.xlu1 %667 }
 0x787   :  { %v673_v32 = vmul.f32 %v668_v31, %v637_v29 }
 0x788   :  { %679 = vrot.lane.b32.xlu0 %v674_v30, %s2779_s1 }
 0x789   :  { %677 = vrot.lane.b32.xlu1 %v673_v32, %s2779_s1  ;;  %v524_v35 = vpop.permute.xlu0 %523 }
 0x78a   :  { %v522_v36 = vpop.permute.xlu1 %521  ;;  %v528_v37 = vadd.f32 %v524_v35, %v2808_v22 }
 0x78b   :  { %v527_v38 = vadd.f32 %v522_v36, %v2810_v23 }
 0x78c   :  { %625 = vrot.lane.b32.xlu0 %v622_v33, %s2780_s20  ;;  %v640_v39 = vmul.f32 0.5, %v528_v37 }
 0x78d   :  { %623 = vrot.lane.b32.xlu1 %v621_v34, %s2780_s20  ;;  %v639_v40 = vmul.f32 0.5, %v527_v38 }
 0x78e   :  { %2617 = vtanh.f32 %v640_v39 }
 0x78f   :  { %2619 = vtanh.f32 %v639_v40 }
 0x79b   :  { %v2618_v42 = vpop.eup %2617 }
 0x79c   :  { %v2620_v44 = vpop.eup %2619  ;;  %v644_v45 = vmul.f32 0.5, %v2618_v42 }
 0x79d   :  { %v643_v46 = vmul.f32 0.5, %v2620_v44 }
 0x79e   :  { %v646_v47 = vadd.f32 0.5, %v644_v45 }
 0x79f   :  { %v645_v49 = vadd.f32 0.5, %v643_v46 }
 0x7a0   :  { %v664_v54 = vmul.f32 %v660_v50, %v646_v47 }
 0x7a1   :  { %v663_v56 = vmul.f32 %v659_v53, %v645_v49 }
 0x7fa   :  { %v680_v55 = vpop.permute.xlu0 %679 }
 0x7fb   :  { %v2976_v57 = vadd.f32 %v680_v55, %v664_v54  ;;  %v678_v58 = vpop.permute.xlu1 %677 }
 0x7fc   :  { %v2978_v59 = vadd.f32 %v678_v58, %v663_v56 }
 0x7fd   :  { %2621 = vtanh.f32 %v2976_v57 }
 0x7fe   :  { %2623 = vtanh.f32 %v2978_v59  ;;  %v626_v12 = vpop.permute.xlu0 %625 }
 0x7ff   :  { %v624_v15 = vpop.permute.xlu1 %623  ;;  %v630_v63 = vadd.f32 %v626_v12, %v2808_v22 }
 0x800   :  { %v629_v1 = vadd.f32 %v624_v15, %v2810_v23 }
 0x801   :  { %v650_v2 = vmul.f32 0.5, %v630_v63 }
 0x802   :  { %v649_v7 = vmul.f32 0.5, %v629_v1 }
 0x803   :  { %2625 = vtanh.f32 %v650_v2 }
 0x804   :  { %2627 = vtanh.f32 %v649_v7 }
 0x80a   :  { %v2622_v61 = vpop.eup %2621 }
 0x80b   :  { %v2624_v62 = vpop.eup %2623  ;;  %691 = vrot.lane.b32.xlu0 %v2622_v61, %s2778_s0 }
 0x80c   :  { %689 = vrot.lane.b32.xlu1 %v2624_v62, %s2778_s0 }
 0x810   :  { %v2626_v8 = vpop.eup %2625 }
 0x811   :  { %v2628_v9 = vpop.eup %2627  ;;  %v654_v10 = vmul.f32 0.5, %v2626_v8 }
 0x812   :  { %v653_v11 = vmul.f32 0.5, %v2628_v9 }
 0x813   :  { %v656_v13 = vadd.f32 0.5, %v654_v10 }
 0x814   :  { %v655_v16 = vadd.f32 0.5, %v653_v11 }
 0x87d   :  { %v692_v14 = vpop.permute.xlu0 %691 }
 0x87e   :  { %v696_v17 = vmul.f32 %v692_v14, %v656_v13  ;;  %v690_v41 = vpop.permute.xlu1 %689 }
 0x87f   :  { %v695_v43 = vmul.f32 %v690_v41, %v655_v16 }
 0x880   :  { %v698_v18 = vpack.c.bf16 %v696_v17, %v696_v17 }
 0x881   :  { %v697_v19 = vpack.c.bf16 %v695_v43, %v695_v43 }
 0x882   :  { %v702_v20 = vunpack.c.l.b16 %v698_v18 }
 0x883   :  { %v701_v21 = vunpack.c.l.b16 %v697_v19 }
 0x884   :  { %v704_v24 = vrot.slane %v702_v20, 1 }
 0x885   :  { %v703_v25 = vrot.slane %v701_v21, 2 }
 0x887   :  { %v705_v26 = vsel %vm126_vm1, %v704_v24, %v703_v25 }
 0x888   :  { %v706_v27 = vpack.c.b16 %v705_v26, %v705_v26 }
 0x88a   :  { %707 = vrot.lane.b32.xlu1 %v706_v27, %s2779_s1 }
 0x8fc   :  { %v708_v28 = vpop.permute.xlu1 %707 }
 0x8fd   :  { %2396 = vmatmul.mubr.msk.bf16.vlgmr.msra.gmra.mxu0 %vm131_vm2, %v708_v28  ;;  %2404 = vmatmul.mubr.msk.bf16.vlgmr.msra.gmra.mxu1 %vm131_vm2, %v708_v28 }
 0x8fe   :  { %2408 = vmatpush3.bf16.msra.mxu0 %v2848_v60  ;;  %2416 = vmatpush3.bf16.msra.mxu1 %v2875_v5 }
 0x8ff   :  { %2409 = vmatprep.subr.bf16.mxu0 %v2781_v51  ;;  %2417 = vmatprep.subr.bf16.mxu1 %v2781_v51 }
 0x900   :  { %2411 = vmatprep.mubr.msk.bf16.mxu0 %vm2782_vm0, %v2781_v51  ;;  %2419 = vmatprep.mubr.msk.bf16.mxu1 %vm2782_vm0, %v2781_v51 }
 0x902   :  { %2410 = vmatpush3.bf16.msra.mxu0 %v2867_v3  ;;  %2418 = vmatpush3.bf16.msra.mxu1 %v2887_v6 }
 0x903   :  { %2431 = vmatprep.subr.bf16.mxu1 %v2781_v51  ;;  %2423 = vmatprep.subr.bf16.mxu0 %v2781_v51 }
 0x905   :  { %2412 = vmatmul.mubr.msk.bf16.vlgmr.msra.gmra.mxu0 %vm131_vm2, %v708_v28  ;;  %2420 = vmatmul.mubr.msk.bf16.vlgmr.msra.gmra.mxu1 %vm131_vm2, %v708_v28 }
 0x906   :  { %2432 = vmatpush3.bf16.msra.mxu1 %v2851_v0  ;;  %2424 = vmatpush3.bf16.msra.mxu0 %v2828_v48 }
 0x907   :  { %2433 = vmatprep.subr.bf16.mxu1 %v2781_v51  ;;  %2425 = vmatprep.subr.bf16.mxu0 %v2781_v51 }
 0x908   :  { %2427 = vmatprep.mubr.msk.bf16.mxu0 %vm2782_vm0, %v2781_v51  ;;  %2435 = vmatprep.mubr.msk.bf16.mxu1 %vm2782_vm0, %v2781_v51 }
 0x90a   :  { %2434 = vmatpush3.bf16.msra.mxu1 %v2871_v4  ;;  %2426 = vmatpush3.bf16.msra.mxu0 %v2842_v52 }
 0x90b   :  { %2439 = vmatprep.subr.bf16.mxu0 %v2781_v51  ;;  %2447 = vmatprep.subr.bf16.mxu1 %v2781_v51 }
 0x9bd   :  { %v746_v29 = vpop.f32.mrf.mxu0  ;;  %v793_v30 = vpop.f32.mrf.mxu1 }
 0x9be   :  { %v801_v61 = vrot.slane %v793_v30, 6  ;;  %v800_v62 = vrot.slane %v793_v30, 5  ;;  %v754_v12 = vrot.slane %v746_v29, 6  ;;  %v753_v15 = vrot.slane %v746_v29, 5 }
 0x9bf   :  { %v2397_v31 = vpop.f32.mrf.mxu0  ;;  %v2405_v32 = vpop.f32.mrf.mxu1 }
 0x9c0   :  { %v758_v63 = vadd.f32 %v754_v12, %v2808_v22  ;;  %v757_v1 = vadd.f32 %v753_v15, %v2810_v23 }
 0x9c1   :  { %v749_v33 = vpop.f32.mrf.mxu0  ;;  %v796_v34 = vpop.f32.mrf.mxu1 }
 0x9c2   :  { %v913_v2 = vmul.f32 0.5, %v758_v63  ;;  %v912_v7 = vmul.f32 0.5, %v757_v1  ;;  %v941_v34 = vrot.slane %v2976_v57, 7 }
 0x9c3   :  { %v2398_v35 = vpop.f32.mrf.mxu0  ;;  %v2406_v36 = vpop.f32.mrf.mxu1 }
 0x9c4   :  { %v940_v35 = vrot.slane %v2978_v59, 7 }
 0x9c5   :  { %v844_v37 = vpop.f32.mrf.mxu0  ;;  %v895_v38 = vpop.f32.mrf.mxu1 }
 0x9c6   :  { %v851_v39 = vrot.slane %v844_v37, 5  ;;  %v852_v40 = vrot.slane %v844_v37, 6  ;;  %v903_v18 = vrot.slane %v895_v38, 6  ;;  %v902_v19 = vrot.slane %v895_v38, 5 }
 0x9c7   :  { %v2413_v42 = vpop.f32.mrf.mxu0  ;;  %v2421_v44 = vpop.f32.mrf.mxu1 }
 0x9c8   :  { %855 = vrot.lane.b32.xlu1 %v852_v40, %s2778_s0  ;;  %853 = vrot.lane.b32.xlu0 %v851_v39, %s2778_s0 }
 0x9c9   :  { %v847_v45 = vpop.f32.mrf.mxu0  ;;  %v898_v46 = vpop.f32.mrf.mxu1 }
 0x9cb   :  { %v2414_v47 = vpop.f32.mrf.mxu0  ;;  %v2422_v49 = vpop.f32.mrf.mxu1 }
 0xa3a   :  { %v856_v50 = vpop.permute.xlu1 %855  ;;  %v854_v53 = vpop.permute.xlu0 %853 }
 0xa3b   :  { %v860_v54 = vadd.f32 %v856_v50, %v2808_v22  ;;  %v859_v55 = vadd.f32 %v854_v53, %v2810_v23 }
 0xa3d   :  { %2629 = vtanh.f32 %v860_v54 }
 0xa3e   :  { %2631 = vtanh.f32 %v859_v55 }
 0xa3f   :  { %2633 = vtanh.f32 %v913_v2 }
 0xa40   :  { %2635 = vtanh.f32 %v912_v7 }
 0xa4a   :  { %v2630_v56 = vpop.eup %2629 }
 0xa4b   :  { %v2632_v58 = vpop.eup %2631  ;;  %950 = vrot.lane.b32.xlu1 %v2630_v56, %s2778_s0 }
 0xa4c   :  { %948 = vrot.lane.b32.xlu0 %v2632_v58, %s2778_s0  ;;  %v2634_v8 = vpop.eup %2633 }
 0xa4d   :  { %v2636_v9 = vpop.eup %2635  ;;  %v917_v10 = vmul.f32 0.5, %v2634_v8 }
 0xa4e   :  { %v916_v11 = vmul.f32 0.5, %v2636_v9 }
 0xa4f   :  { %804 = vrot.lane.b32.xlu1 %v801_v61, %s2779_s1  ;;  %v919_v13 = vadd.f32 0.5, %v917_v10 }
 0xa50   :  { %802 = vrot.lane.b32.xlu0 %v800_v62, %s2779_s1  ;;  %v918_v16 = vadd.f32 0.5, %v916_v11 }
 0xabd   :  { %v951_v14 = vpop.permute.xlu1 %950 }
 0xabe   :  { %v955_v17 = vmul.f32 %v951_v14, %v919_v13  ;;  %v949_v41 = vpop.permute.xlu0 %948 }
 0xabf   :  { %v954_v43 = vmul.f32 %v949_v41, %v918_v16 }
 0xac0   :  { %960 = vrot.lane.b32.xlu1 %v955_v17, %s2779_s1 }
 0xac1   :  { %958 = vrot.lane.b32.xlu0 %v954_v43, %s2779_s1  ;;  %v805_v20 = vpop.permute.xlu1 %804 }
 0xac2   :  { %v803_v21 = vpop.permute.xlu0 %802  ;;  %v809_v24 = vadd.f32 %v805_v20, %v2808_v22 }
 0xac3   :  { %v808_v25 = vadd.f32 %v803_v21, %v2810_v23 }
 0xac4   :  { %906 = vrot.lane.b32.xlu1 %v903_v18, %s2780_s20  ;;  %v921_v26 = vmul.f32 0.5, %v809_v24 }
 0xac5   :  { %904 = vrot.lane.b32.xlu0 %v902_v19, %s2780_s20  ;;  %v920_v27 = vmul.f32 0.5, %v808_v25 }
 0xac6   :  { %2637 = vtanh.f32 %v921_v26 }
 0xac7   :  { %2639 = vtanh.f32 %v920_v27 }
 0xad3   :  { %v2638_v28 = vpop.eup %2637 }
 0xad4   :  { %v2640_v29 = vpop.eup %2639  ;;  %v925_v30 = vmul.f32 0.5, %v2638_v28 }
 0xad5   :  { %v924_v31 = vmul.f32 0.5, %v2640_v29 }
 0xad6   :  { %v927_v32 = vadd.f32 0.5, %v925_v30 }
 0xad7   :  { %v926_v33 = vadd.f32 0.5, %v924_v31 }
 0xad8   :  { %v945_v36 = vmul.f32 %v941_v34, %v927_v32 }
 0xad9   :  { %v944_v38 = vmul.f32 %v940_v35, %v926_v33 }
 0xb32   :  { %v961_v37 = vpop.permute.xlu1 %960 }
 0xb33   :  { %v3034_v39 = vadd.f32 %v961_v37, %v945_v36  ;;  %v959_v40 = vpop.permute.xlu0 %958 }
 0xb34   :  { %v3036_v42 = vadd.f32 %v959_v40, %v944_v38 }
 0xb35   :  { %2641 = vtanh.f32 %v3034_v39 }
 0xb36   :  { %2643 = vtanh.f32 %v3036_v42  ;;  %v907_v57 = vpop.permute.xlu1 %906 }
 0xb37   :  { %v905_v59 = vpop.permute.xlu0 %904  ;;  %v911_v46 = vadd.f32 %v907_v57, %v2808_v22 }
 0xb38   :  { %v910_v47 = vadd.f32 %v905_v59, %v2810_v23 }
 0xb39   :  { %v931_v49 = vmul.f32 0.5, %v911_v46 }
 0xb3a   :  { %v930_v50 = vmul.f32 0.5, %v910_v47 }
 0xb3b   :  { %2645 = vtanh.f32 %v931_v49 }
 0xb3c   :  { %2647 = vtanh.f32 %v930_v50 }
 0xb42   :  { %v2642_v44 = vpop.eup %2641 }
 0xb43   :  { %v2644_v45 = vpop.eup %2643  ;;  %972 = vrot.lane.b32.xlu1 %v2642_v44, %s2778_s0 }
 0xb44   :  { %970 = vrot.lane.b32.xlu0 %v2644_v45, %s2778_s0 }
 0xb48   :  { %v2646_v53 = vpop.eup %2645 }
 0xb49   :  { %v2648_v54 = vpop.eup %2647  ;;  %v935_v55 = vmul.f32 0.5, %v2646_v53 }
 0xb4a   :  { %v934_v56 = vmul.f32 0.5, %v2648_v54 }
 0xb4b   :  { %v937_v58 = vadd.f32 0.5, %v935_v55 }
 0xb4c   :  { %v936_v62 = vadd.f32 0.5, %v934_v56 }
 0xbb5   :  { %v973_v61 = vpop.permute.xlu1 %972 }
 0xbb6   :  { %v977_v12 = vmul.f32 %v973_v61, %v937_v58  ;;  %v971_v15 = vpop.permute.xlu0 %970 }
 0xbb7   :  { %v976_v63 = vmul.f32 %v971_v15, %v936_v62 }
 0xbb8   :  { %v979_v1 = vpack.c.bf16 %v977_v12, %v977_v12 }
 0xbb9   :  { %v978_v2 = vpack.c.bf16 %v976_v63, %v976_v63 }
 0xbba   :  { %v983_v7 = vunpack.c.l.b16 %v979_v1 }
 0xbbb   :  { %v982_v8 = vunpack.c.l.b16 %v978_v2 }
 0xbbc   :  { %v985_v9 = vrot.slane %v983_v7, 2 }
 0xbbd   :  { %v984_v10 = vrot.slane %v982_v8, 3 }
 0xbbf   :  { %v986_v11 = vsel %vm126_vm1, %v985_v9, %v984_v10 }
 0xbc0   :  { %v987_v13 = vpack.c.b16 %v986_v11, %v986_v11 }
 0xbc2   :  { %988 = vrot.lane.b32.xlu0 %v987_v13, %s2779_s1 }
 0xc34   :  { %v989_v14 = vpop.permute.xlu0 %988 }
 0xc35   :  { %2428 = vmatmul.mubr.msk.bf16.vlgmr.msra.gmra.mxu0 %vm131_vm2, %v989_v14  ;;  %2436 = vmatmul.mubr.msk.bf16.vlgmr.msra.gmra.mxu1 %vm131_vm2, %v989_v14 }
 0xc36   :  { %2440 = vmatpush3.bf16.msra.mxu0 %v2848_v60  ;;  %2448 = vmatpush3.bf16.msra.mxu1 %v2875_v5 }
 0xc37   :  { %2441 = vmatprep.subr.bf16.mxu0 %v2781_v51  ;;  %2449 = vmatprep.subr.bf16.mxu1 %v2781_v51 }
 0xc38   :  { %2443 = vmatprep.mubr.msk.bf16.mxu0 %vm2782_vm0, %v2781_v51  ;;  %2451 = vmatprep.mubr.msk.bf16.mxu1 %vm2782_vm0, %v2781_v51 }
 0xc3a   :  { %2442 = vmatpush3.bf16.msra.mxu0 %v2867_v3  ;;  %2450 = vmatpush3.bf16.msra.mxu1 %v2887_v6 }
 0xc3b   :  { %2463 = vmatprep.subr.bf16.mxu1 %v2781_v51  ;;  %2455 = vmatprep.subr.bf16.mxu0 %v2781_v51 }
 0xc3d   :  { %2444 = vmatmul.mubr.msk.bf16.vlgmr.msra.gmra.mxu0 %vm131_vm2, %v989_v14  ;;  %2452 = vmatmul.mubr.msk.bf16.vlgmr.msra.gmra.mxu1 %vm131_vm2, %v989_v14 }
 0xc3e   :  { %2464 = vmatpush3.bf16.msra.mxu1 %v2851_v0  ;;  %2456 = vmatpush3.bf16.msra.mxu0 %v2828_v48 }
 0xc3f   :  { %2465 = vmatprep.subr.bf16.mxu1 %v2781_v51  ;;  %2457 = vmatprep.subr.bf16.mxu0 %v2781_v51 }
 0xc40   :  { %2459 = vmatprep.mubr.msk.bf16.mxu0 %vm2782_vm0, %v2781_v51  ;;  %2467 = vmatprep.mubr.msk.bf16.mxu1 %vm2782_vm0, %v2781_v51 }
 0xc42   :  { %2466 = vmatpush3.bf16.msra.mxu1 %v2871_v4  ;;  %2458 = vmatpush3.bf16.msra.mxu0 %v2842_v52 }
 0xc43   :  { %2471 = vmatprep.subr.bf16.mxu0 %v2781_v51  ;;  %2479 = vmatprep.subr.bf16.mxu1 %v2781_v51 }
 0xcf5   :  { %v1027_v16 = vpop.f32.mrf.mxu0  ;;  %v1074_v17 = vpop.f32.mrf.mxu1 }
 0xcf6   :  { %v1082_v44 = vrot.slane %v1074_v17, 5  ;;  %v1081_v45 = vrot.slane %v1074_v17, 4  ;;  %v1035_v57 = vrot.slane %v1027_v16, 5  ;;  %v1034_v59 = vrot.slane %v1027_v16, 4 }
 0xcf7   :  { %v2429_v41 = vpop.f32.mrf.mxu0  ;;  %v2437_v43 = vpop.f32.mrf.mxu1 }
 0xcf8   :  { %v1039_v46 = vadd.f32 %v1035_v57, %v2808_v22  ;;  %v1038_v47 = vadd.f32 %v1034_v59, %v2810_v23 }
 0xcf9   :  { %v1030_v18 = vpop.f32.mrf.mxu0  ;;  %v1077_v19 = vpop.f32.mrf.mxu1 }
 0xcfa   :  { %v1194_v49 = vmul.f32 0.5, %v1039_v46  ;;  %v1193_v50 = vmul.f32 0.5, %v1038_v47  ;;  %v1222_v19 = vrot.slane %v3034_v39, 7 }
 0xcfb   :  { %v2430_v20 = vpop.f32.mrf.mxu0  ;;  %v2438_v21 = vpop.f32.mrf.mxu1 }
 0xcfc   :  { %v1221_v20 = vrot.slane %v3036_v42, 7 }
 0xcfd   :  { %v1125_v24 = vpop.f32.mrf.mxu0  ;;  %v1176_v25 = vpop.f32.mrf.mxu1 }
 0xcfe   :  { %v1132_v26 = vrot.slane %v1125_v24, 4  ;;  %v1133_v27 = vrot.slane %v1125_v24, 5  ;;  %v1184_v1 = vrot.slane %v1176_v25, 5  ;;  %v1183_v2 = vrot.slane %v1176_v25, 4 }
 0xcff   :  { %v2445_v28 = vpop.f32.mrf.mxu0  ;;  %v2453_v29 = vpop.f32.mrf.mxu1 }
 0xd00   :  { %1136 = vrot.lane.b32.xlu0 %v1133_v27, %s2778_s0  ;;  %1134 = vrot.lane.b32.xlu1 %v1132_v26, %s2778_s0 }
 0xd01   :  { %v1128_v30 = vpop.f32.mrf.mxu0  ;;  %v1179_v31 = vpop.f32.mrf.mxu1 }
 0xd03   :  { %v2446_v32 = vpop.f32.mrf.mxu0  ;;  %v2454_v33 = vpop.f32.mrf.mxu1 }
 0xd72   :  { %v1137_v34 = vpop.permute.xlu0 %1136  ;;  %v1135_v35 = vpop.permute.xlu1 %1134 }
 0xd73   :  { %v1141_v36 = vadd.f32 %v1137_v34, %v2808_v22  ;;  %v1140_v37 = vadd.f32 %v1135_v35, %v2810_v23 }
 0xd75   :  { %2649 = vtanh.f32 %v1141_v36 }
 0xd76   :  { %2651 = vtanh.f32 %v1140_v37 }
 0xd77   :  { %2653 = vtanh.f32 %v1194_v49 }
 0xd78   :  { %2655 = vtanh.f32 %v1193_v50 }
 0xd82   :  { %v2650_v38 = vpop.eup %2649 }
 0xd83   :  { %v2652_v40 = vpop.eup %2651  ;;  %1231 = vrot.lane.b32.xlu0 %v2650_v38, %s2778_s0 }
 0xd84   :  { %1229 = vrot.lane.b32.xlu1 %v2652_v40, %s2778_s0  ;;  %v2654_v53 = vpop.eup %2653 }
 0xd85   :  { %v2656_v54 = vpop.eup %2655  ;;  %v1198_v55 = vmul.f32 0.5, %v2654_v53 }
 0xd86   :  { %v1197_v56 = vmul.f32 0.5, %v2656_v54 }
 0xd87   :  { %1085 = vrot.lane.b32.xlu0 %v1082_v44, %s2779_s1  ;;  %v1200_v58 = vadd.f32 0.5, %v1198_v55 }
 0xd88   :  { %1083 = vrot.lane.b32.xlu1 %v1081_v45, %s2779_s1  ;;  %v1199_v62 = vadd.f32 0.5, %v1197_v56 }
 0xdf5   :  { %v1232_v61 = vpop.permute.xlu0 %1231 }
 0xdf6   :  { %v1236_v12 = vmul.f32 %v1232_v61, %v1200_v58  ;;  %v1230_v15 = vpop.permute.xlu1 %1229 }
 0xdf7   :  { %v1235_v63 = vmul.f32 %v1230_v15, %v1199_v62 }
 0xdf8   :  { %1241 = vrot.lane.b32.xlu0 %v1236_v12, %s2779_s1 }
 0xdf9   :  { %1239 = vrot.lane.b32.xlu1 %v1235_v63, %s2779_s1  ;;  %v1086_v7 = vpop.permute.xlu0 %1085 }
 0xdfa   :  { %v1084_v8 = vpop.permute.xlu1 %1083  ;;  %v1090_v9 = vadd.f32 %v1086_v7, %v2808_v22 }
 0xdfb   :  { %v1089_v10 = vadd.f32 %v1084_v8, %v2810_v23 }
 0xdfc   :  { %1187 = vrot.lane.b32.xlu0 %v1184_v1, %s2780_s20  ;;  %v1202_v11 = vmul.f32 0.5, %v1090_v9 }
 0xdfd   :  { %1185 = vrot.lane.b32.xlu1 %v1183_v2, %s2780_s20  ;;  %v1201_v13 = vmul.f32 0.5, %v1089_v10 }
 0xdfe   :  { %2657 = vtanh.f32 %v1202_v11 }
 0xdff   :  { %2659 = vtanh.f32 %v1201_v13 }
 0xe0b   :  { %v2658_v14 = vpop.eup %2657 }
 0xe0c   :  { %v2660_v16 = vpop.eup %2659  ;;  %v1206_v17 = vmul.f32 0.5, %v2658_v14 }
 0xe0d   :  { %v1205_v41 = vmul.f32 0.5, %v2660_v16 }
 0xe0e   :  { %v1208_v43 = vadd.f32 0.5, %v1206_v17 }
 0xe0f   :  { %v1207_v18 = vadd.f32 0.5, %v1205_v41 }
 0xe10   :  { %v1226_v21 = vmul.f32 %v1222_v19, %v1208_v43 }
 0xe11   :  { %v1225_v25 = vmul.f32 %v1221_v20, %v1207_v18 }
 0xe6a   :  { %v1242_v24 = vpop.permute.xlu0 %1241 }
 0xe6b   :  { %v3092_v26 = vadd.f32 %v1242_v24, %v1226_v21  ;;  %v1240_v27 = vpop.permute.xlu1 %1239 }
 0xe6c   :  { %v3094_v28 = vadd.f32 %v1240_v27, %v1225_v25 }
 0xe6d   :  { %2661 = vtanh.f32 %v3092_v26 }
 0xe6e   :  { %2663 = vtanh.f32 %v3094_v28  ;;  %v1188_v39 = vpop.permute.xlu0 %1187 }
 0xe6f   :  { %v1186_v42 = vpop.permute.xlu1 %1185  ;;  %v1192_v31 = vadd.f32 %v1188_v39, %v2808_v22 }
 0xe70   :  { %v1191_v32 = vadd.f32 %v1186_v42, %v2810_v23 }
 0xe71   :  { %v1212_v33 = vmul.f32 0.5, %v1192_v31 }
 0xe72   :  { %v1211_v34 = vmul.f32 0.5, %v1191_v32 }
 0xe73   :  { %2665 = vtanh.f32 %v1212_v33 }
 0xe74   :  { %2667 = vtanh.f32 %v1211_v34 }
 0xe7a   :  { %v2662_v29 = vpop.eup %2661 }
 0xe7b   :  { %v2664_v30 = vpop.eup %2663  ;;  %1253 = vrot.lane.b32.xlu0 %v2662_v29, %s2778_s0 }
 0xe7c   :  { %1251 = vrot.lane.b32.xlu1 %v2664_v30, %s2778_s0 }
 0xe80   :  { %v2666_v35 = vpop.eup %2665 }
 0xe81   :  { %v2668_v36 = vpop.eup %2667  ;;  %v1216_v37 = vmul.f32 0.5, %v2666_v35 }
 0xe82   :  { %v1215_v38 = vmul.f32 0.5, %v2668_v36 }
 0xe83   :  { %v1218_v40 = vadd.f32 0.5, %v1216_v37 }
 0xe84   :  { %v1217_v45 = vadd.f32 0.5, %v1215_v38 }
 0xeed   :  { %v1254_v44 = vpop.permute.xlu0 %1253 }
 0xeee   :  { %v1258_v57 = vmul.f32 %v1254_v44, %v1218_v40  ;;  %v1252_v59 = vpop.permute.xlu1 %1251 }
 0xeef   :  { %v1257_v46 = vmul.f32 %v1252_v59, %v1217_v45 }
 0xef0   :  { %v1260_v47 = vpack.c.bf16 %v1258_v57, %v1258_v57 }
 0xef1   :  { %v1259_v49 = vpack.c.bf16 %v1257_v46, %v1257_v46 }
 0xef2   :  { %v1264_v50 = vunpack.c.l.b16 %v1260_v47 }
 0xef3   :  { %v1263_v53 = vunpack.c.l.b16 %v1259_v49 }
 0xef4   :  { %v1266_v54 = vrot.slane %v1264_v50, 3 }
 0xef5   :  { %v1265_v55 = vrot.slane %v1263_v53, 4 }
 0xef7   :  { %v1267_v56 = vsel %vm126_vm1, %v1266_v54, %v1265_v55 }
 0xef8   :  { %v1268_v58 = vpack.c.b16 %v1267_v56, %v1267_v56 }
 0xefa   :  { %1269 = vrot.lane.b32.xlu1 %v1268_v58, %s2779_s1 }
 0xf6c   :  { %v1270_v61 = vpop.permute.xlu1 %1269 }
 0xf6d   :  { %2460 = vmatmul.mubr.msk.bf16.vlgmr.msra.gmra.mxu0 %vm131_vm2, %v1270_v61  ;;  %2468 = vmatmul.mubr.msk.bf16.vlgmr.msra.gmra.mxu1 %vm131_vm2, %v1270_v61 }
 0xf6e   :  { %2472 = vmatpush3.bf16.msra.mxu0 %v2848_v60  ;;  %2480 = vmatpush3.bf16.msra.mxu1 %v2875_v5 }
 0xf6f   :  { %2473 = vmatprep.subr.bf16.mxu0 %v2781_v51  ;;  %2481 = vmatprep.subr.bf16.mxu1 %v2781_v51 }
 0xf70   :  { %2475 = vmatprep.mubr.msk.bf16.mxu0 %vm2782_vm0, %v2781_v51  ;;  %2483 = vmatprep.mubr.msk.bf16.mxu1 %vm2782_vm0, %v2781_v51 }
 0xf72   :  { %2474 = vmatpush3.bf16.msra.mxu0 %v2867_v3  ;;  %2482 = vmatpush3.bf16.msra.mxu1 %v2887_v6 }
 0xf73   :  { %2495 = vmatprep.subr.bf16.mxu1 %v2781_v51  ;;  %2487 = vmatprep.subr.bf16.mxu0 %v2781_v51 }
 0xf75   :  { %2476 = vmatmul.mubr.msk.bf16.vlgmr.msra.gmra.mxu0 %vm131_vm2, %v1270_v61  ;;  %2484 = vmatmul.mubr.msk.bf16.vlgmr.msra.gmra.mxu1 %vm131_vm2, %v1270_v61 }
 0xf76   :  { %2496 = vmatpush3.bf16.msra.mxu1 %v2851_v0  ;;  %2488 = vmatpush3.bf16.msra.mxu0 %v2828_v48 }
 0xf77   :  { %2497 = vmatprep.subr.bf16.mxu1 %v2781_v51  ;;  %2489 = vmatprep.subr.bf16.mxu0 %v2781_v51 }
 0xf78   :  { %2491 = vmatprep.mubr.msk.bf16.mxu0 %vm2782_vm0, %v2781_v51  ;;  %2499 = vmatprep.mubr.msk.bf16.mxu1 %vm2782_vm0, %v2781_v51 }
 0xf7a   :  { %2498 = vmatpush3.bf16.msra.mxu1 %v2871_v4  ;;  %2490 = vmatpush3.bf16.msra.mxu0 %v2842_v52 }
 0xf7b   :  { %2503 = vmatprep.subr.bf16.mxu0 %v2781_v51  ;;  %2511 = vmatprep.subr.bf16.mxu1 %v2781_v51 }
0x102d   :  { %v1308_v62 = vpop.f32.mrf.mxu0  ;;  %v1355_v12 = vpop.f32.mrf.mxu1 }
0x102e   :  { %v1363_v29 = vrot.slane %v1355_v12, 4  ;;  %v1362_v30 = vrot.slane %v1355_v12, 3  ;;  %v1316_v39 = vrot.slane %v1308_v62, 4  ;;  %v1315_v42 = vrot.slane %v1308_v62, 3 }
0x102f   :  { %v2461_v15 = vpop.f32.mrf.mxu0  ;;  %v2469_v63 = vpop.f32.mrf.mxu1 }
0x1030   :  { %v1320_v31 = vadd.f32 %v1316_v39, %v2808_v22  ;;  %v1319_v32 = vadd.f32 %v1315_v42, %v2810_v23 }
0x1031   :  { %v1311_v1 = vpop.f32.mrf.mxu0  ;;  %v1358_v2 = vpop.f32.mrf.mxu1 }
0x1032   :  { %v1475_v33 = vmul.f32 0.5, %v1320_v31  ;;  %v1474_v34 = vmul.f32 0.5, %v1319_v32  ;;  %v1503_v2 = vrot.slane %v3092_v26, 7 }
0x1033   :  { %v2462_v7 = vpop.f32.mrf.mxu0  ;;  %v2470_v8 = vpop.f32.mrf.mxu1 }
0x1034   :  { %v1502_v7 = vrot.slane %v3094_v28, 7 }
0x1035   :  { %v1406_v9 = vpop.f32.mrf.mxu0  ;;  %v1457_v10 = vpop.f32.mrf.mxu1 }
0x1036   :  { %v1413_v11 = vrot.slane %v1406_v9, 3  ;;  %v1414_v13 = vrot.slane %v1406_v9, 4  ;;  %v1465_v47 = vrot.slane %v1457_v10, 4  ;;  %v1464_v49 = vrot.slane %v1457_v10, 3 }
0x1037   :  { %v2477_v14 = vpop.f32.mrf.mxu0  ;;  %v2485_v16 = vpop.f32.mrf.mxu1 }
0x1038   :  { %1417 = vrot.lane.b32.xlu1 %v1414_v13, %s2778_s0  ;;  %1415 = vrot.lane.b32.xlu0 %v1413_v11, %s2778_s0 }
0x1039   :  { %v1409_v17 = vpop.f32.mrf.mxu0  ;;  %v1460_v41 = vpop.f32.mrf.mxu1 }
0x103b   :  { %v2478_v43 = vpop.f32.mrf.mxu0  ;;  %v2486_v18 = vpop.f32.mrf.mxu1 }
0x10aa   :  { %v1418_v19 = vpop.permute.xlu1 %1417  ;;  %v1416_v20 = vpop.permute.xlu0 %1415 }
0x10ab   :  { %v1422_v21 = vadd.f32 %v1418_v19, %v2808_v22  ;;  %v1421_v24 = vadd.f32 %v1416_v20, %v2810_v23 }
0x10ad   :  { %2669 = vtanh.f32 %v1422_v21 }
0x10ae   :  { %2671 = vtanh.f32 %v1421_v24 }
0x10af   :  { %2673 = vtanh.f32 %v1475_v33 }
0x10b0   :  { %2675 = vtanh.f32 %v1474_v34 }
0x10ba   :  { %v2670_v25 = vpop.eup %2669 }
0x10bb   :  { %v2672_v27 = vpop.eup %2671  ;;  %1512 = vrot.lane.b32.xlu1 %v2670_v25, %s2778_s0 }
0x10bc   :  { %1510 = vrot.lane.b32.xlu0 %v2672_v27, %s2778_s0  ;;  %v2674_v35 = vpop.eup %2673 }
0x10bd   :  { %v2676_v36 = vpop.eup %2675  ;;  %v1479_v37 = vmul.f32 0.5, %v2674_v35 }
0x10be   :  { %v1478_v38 = vmul.f32 0.5, %v2676_v36 }
0x10bf   :  { %1366 = vrot.lane.b32.xlu1 %v1363_v29, %s2779_s1  ;;  %v1481_v40 = vadd.f32 0.5, %v1479_v37 }
0x10c0   :  { %1364 = vrot.lane.b32.xlu0 %v1362_v30, %s2779_s1  ;;  %v1480_v45 = vadd.f32 0.5, %v1478_v38 }
0x112d   :  { %v1513_v44 = vpop.permute.xlu1 %1512 }
0x112e   :  { %v1517_v57 = vmul.f32 %v1513_v44, %v1481_v40  ;;  %v1511_v59 = vpop.permute.xlu0 %1510 }
0x112f   :  { %v1516_v46 = vmul.f32 %v1511_v59, %v1480_v45 }
0x1130   :  { %1522 = vrot.lane.b32.xlu1 %v1517_v57, %s2779_s1 }
0x1131   :  { %1520 = vrot.lane.b32.xlu0 %v1516_v46, %s2779_s1  ;;  %v1367_v50 = vpop.permute.xlu1 %1366 }
0x1132   :  { %v1365_v53 = vpop.permute.xlu0 %1364  ;;  %v1371_v54 = vadd.f32 %v1367_v50, %v2808_v22 }
0x1133   :  { %v1370_v55 = vadd.f32 %v1365_v53, %v2810_v23 }
0x1134   :  { %1468 = vrot.lane.b32.xlu1 %v1465_v47, %s2780_s20  ;;  %v1483_v56 = vmul.f32 0.5, %v1371_v54 }
0x1135   :  { %1466 = vrot.lane.b32.xlu0 %v1464_v49, %s2780_s20  ;;  %v1482_v58 = vmul.f32 0.5, %v1370_v55 }
0x1136   :  { %2677 = vtanh.f32 %v1483_v56 }
0x1137   :  { %2679 = vtanh.f32 %v1482_v58 }
0x1143   :  { %v2678_v61 = vpop.eup %2677 }
0x1144   :  { %v2680_v62 = vpop.eup %2679  ;;  %v1487_v12 = vmul.f32 0.5, %v2678_v61 }
0x1145   :  { %v1486_v15 = vmul.f32 0.5, %v2680_v62 }
0x1146   :  { %v1489_v63 = vadd.f32 0.5, %v1487_v12 }
0x1147   :  { %v1488_v1 = vadd.f32 0.5, %v1486_v15 }
0x1148   :  { %v1507_v8 = vmul.f32 %v1503_v2, %v1489_v63 }
0x1149   :  { %v1506_v10 = vmul.f32 %v1502_v7, %v1488_v1 }
0x11a2   :  { %v1523_v9 = vpop.permute.xlu1 %1522 }
0x11a3   :  { %v3150_v11 = vadd.f32 %v1523_v9, %v1507_v8  ;;  %v1521_v13 = vpop.permute.xlu0 %1520 }
0x11a4   :  { %v3152_v14 = vadd.f32 %v1521_v13, %v1506_v10 }
0x11a5   :  { %2681 = vtanh.f32 %v3150_v11 }
0x11a6   :  { %2683 = vtanh.f32 %v3152_v14  ;;  %v1469_v26 = vpop.permute.xlu1 %1468 }
0x11a7   :  { %v1467_v28 = vpop.permute.xlu0 %1466  ;;  %v1473_v41 = vadd.f32 %v1469_v26, %v2808_v22 }
0x11a8   :  { %v1472_v43 = vadd.f32 %v1467_v28, %v2810_v23 }
0x11a9   :  { %v1493_v18 = vmul.f32 0.5, %v1473_v41 }
0x11aa   :  { %v1492_v19 = vmul.f32 0.5, %v1472_v43 }
0x11ab   :  { %2685 = vtanh.f32 %v1493_v18 }
0x11ac   :  { %2687 = vtanh.f32 %v1492_v19 }
0x11b2   :  { %v2682_v16 = vpop.eup %2681 }
0x11b3   :  { %v2684_v17 = vpop.eup %2683  ;;  %1534 = vrot.lane.b32.xlu1 %v2682_v16, %s2778_s0 }
0x11b4   :  { %1532 = vrot.lane.b32.xlu0 %v2684_v17, %s2778_s0 }
0x11b8   :  { %v2686_v20 = vpop.eup %2685 }
0x11b9   :  { %v2688_v21 = vpop.eup %2687  ;;  %v1497_v24 = vmul.f32 0.5, %v2686_v20 }
0x11ba   :  { %v1496_v25 = vmul.f32 0.5, %v2688_v21 }
0x11bb   :  { %v1499_v27 = vadd.f32 0.5, %v1497_v24 }
0x11bc   :  { %v1498_v30 = vadd.f32 0.5, %v1496_v25 }
0x1225   :  { %v1535_v29 = vpop.permute.xlu1 %1534 }
0x1226   :  { %v1539_v39 = vmul.f32 %v1535_v29, %v1499_v27  ;;  %v1533_v42 = vpop.permute.xlu0 %1532 }
0x1227   :  { %v1538_v31 = vmul.f32 %v1533_v42, %v1498_v30 }
0x1228   :  { %v1541_v32 = vpack.c.bf16 %v1539_v39, %v1539_v39 }
0x1229   :  { %v1540_v33 = vpack.c.bf16 %v1538_v31, %v1538_v31 }
0x122a   :  { %v1545_v34 = vunpack.c.l.b16 %v1541_v32 }
0x122b   :  { %v1544_v35 = vunpack.c.l.b16 %v1540_v33 }
0x122c   :  { %v1547_v36 = vrot.slane %v1545_v34, 4 }
0x122d   :  { %v1546_v37 = vrot.slane %v1544_v35, 5 }
0x122f   :  { %v1548_v38 = vsel %vm126_vm1, %v1547_v36, %v1546_v37 }
0x1230   :  { %v1549_v40 = vpack.c.b16 %v1548_v38, %v1548_v38 }
0x1232   :  { %1550 = vrot.lane.b32.xlu0 %v1549_v40, %s2779_s1 }
0x12a4   :  { %v1551_v44 = vpop.permute.xlu0 %1550 }
0x12a5   :  { %2492 = vmatmul.mubr.msk.bf16.vlgmr.msra.gmra.mxu0 %vm131_vm2, %v1551_v44  ;;  %2500 = vmatmul.mubr.msk.bf16.vlgmr.msra.gmra.mxu1 %vm131_vm2, %v1551_v44 }
0x12a6   :  { %2504 = vmatpush3.bf16.msra.mxu0 %v2848_v60  ;;  %2512 = vmatpush3.bf16.msra.mxu1 %v2875_v5 }
0x12a7   :  { %2505 = vmatprep.subr.bf16.mxu0 %v2781_v51  ;;  %2513 = vmatprep.subr.bf16.mxu1 %v2781_v51 }
0x12a8   :  { %2507 = vmatprep.mubr.msk.bf16.mxu0 %vm2782_vm0, %v2781_v51  ;;  %2515 = vmatprep.mubr.msk.bf16.mxu1 %vm2782_vm0, %v2781_v51 }
0x12aa   :  { %2506 = vmatpush3.bf16.msra.mxu0 %v2867_v3  ;;  %2514 = vmatpush3.bf16.msra.mxu1 %v2887_v6 }
0x12ab   :  { %2527 = vmatprep.subr.bf16.mxu1 %v2781_v51  ;;  %2519 = vmatprep.subr.bf16.mxu0 %v2781_v51 }
0x12ad   :  { %2508 = vmatmul.mubr.msk.bf16.vlgmr.msra.gmra.mxu0 %vm131_vm2, %v1551_v44  ;;  %2516 = vmatmul.mubr.msk.bf16.vlgmr.msra.gmra.mxu1 %vm131_vm2, %v1551_v44 }
0x12ae   :  { %2528 = vmatpush3.bf16.msra.mxu1 %v2851_v0  ;;  %2520 = vmatpush3.bf16.msra.mxu0 %v2828_v48 }
0x12af   :  { %2529 = vmatprep.subr.bf16.mxu1 %v2781_v51  ;;  %2521 = vmatprep.subr.bf16.mxu0 %v2781_v51 }
0x12b0   :  { %2523 = vmatprep.mubr.msk.bf16.mxu0 %vm2782_vm0, %v2781_v51  ;;  %2531 = vmatprep.mubr.msk.bf16.mxu1 %vm2782_vm0, %v2781_v51 }
0x12b2   :  { %2530 = vmatpush3.bf16.msra.mxu1 %v2871_v4  ;;  %2522 = vmatpush3.bf16.msra.mxu0 %v2842_v52 }
0x12b3   :  { %2535 = vmatprep.subr.bf16.mxu0 %v2781_v51  ;;  %2543 = vmatprep.subr.bf16.mxu1 %v2781_v51 }
0x1365   :  { %v1589_v0 = vpop.f32.mrf.mxu0  ;;  %v1636_v48 = vpop.f32.mrf.mxu1 }
0x1366   :  { %v1644_v8 = vrot.slane %v1636_v48, 3  ;;  %v1643_v9 = vrot.slane %v1636_v48, 2  ;;  %v1597_v10 = vrot.slane %v1589_v0, 3  ;;  %v1596_v13 = vrot.slane %v1589_v0, 2 }
0x1367   :  { %v2493_v45 = vpop.f32.mrf.mxu0  ;;  %v2501_v57 = vpop.f32.mrf.mxu1  ;;  %v1784_v48 = vrot.slane %v3150_v11, 7 }
0x1368   :  { %v1601_v16 = vadd.f32 %v1597_v10, %v2808_v22  ;;  %v1600_v17 = vadd.f32 %v1596_v13, %v2810_v23  ;;  %v1783_v45 = vrot.slane %v3152_v14, 7 }
0x1369   :  { %v1592_v59 = vpop.f32.mrf.mxu0  ;;  %v1639_v46 = vpop.f32.mrf.mxu1 }
0x136a   :  { %v1756_v26 = vmul.f32 0.5, %v1601_v16  ;;  %v1755_v28 = vmul.f32 0.5, %v1600_v17 }
0x136b   :  { %v2494_v47 = vpop.f32.mrf.mxu0  ;;  %v2502_v49 = vpop.f32.mrf.mxu1 }
0x136d   :  { %v1687_v50 = vpop.f32.mrf.mxu0  ;;  %v1738_v53 = vpop.f32.mrf.mxu1 }
0x136e   :  { %v1694_v54 = vrot.slane %v1687_v50, 2  ;;  %v1695_v55 = vrot.slane %v1687_v50, 3  ;;  %v1746_v30 = vrot.slane %v1738_v53, 3  ;;  %v1745_v39 = vrot.slane %v1738_v53, 2 }
0x136f   :  { %v2509_v56 = vpop.f32.mrf.mxu0  ;;  %v2517_v4 = vpop.f32.mrf.mxu1 }
0x1370   :  { %1698 = vrot.lane.b32.xlu0 %v1695_v55, %s2778_s0  ;;  %1696 = vrot.lane.b32.xlu1 %v1694_v54, %s2778_s0 }
0x1371   :  { %v1690_v52 = vpop.f32.mrf.mxu0  ;;  %v1741_v58 = vpop.f32.mrf.mxu1 }
0x1373   :  { %v2510_v61 = vpop.f32.mrf.mxu0  ;;  %v2518_v62 = vpop.f32.mrf.mxu1 }
0x13e2   :  { %v1699_v12 = vpop.permute.xlu0 %1698  ;;  %v1697_v15 = vpop.permute.xlu1 %1696 }
0x13e3   :  { %v1703_v63 = vadd.f32 %v1699_v12, %v2808_v22  ;;  %v1702_v1 = vadd.f32 %v1697_v15, %v2810_v23 }
0x13e5   :  { %2689 = vtanh.f32 %v1703_v63 }
0x13e6   :  { %2691 = vtanh.f32 %v1702_v1 }
0x13e7   :  { %2693 = vtanh.f32 %v1756_v26 }
0x13e8   :  { %2695 = vtanh.f32 %v1755_v28 }
0x13f2   :  { %v2690_v2 = vpop.eup %2689 }
0x13f3   :  { %v2692_v7 = vpop.eup %2691  ;;  %1793 = vrot.lane.b32.xlu0 %v2690_v2, %s2778_s0 }
0x13f4   :  { %1791 = vrot.lane.b32.xlu1 %v2692_v7, %s2778_s0  ;;  %v2694_v41 = vpop.eup %2693 }
0x13f5   :  { %v2696_v43 = vpop.eup %2695  ;;  %v1760_v18 = vmul.f32 0.5, %v2694_v41 }
0x13f6   :  { %v1759_v19 = vmul.f32 0.5, %v2696_v43 }
0x13f7   :  { %1647 = vrot.lane.b32.xlu0 %v1644_v8, %s2779_s1  ;;  %v1762_v20 = vadd.f32 0.5, %v1760_v18 }
0x13f8   :  { %1645 = vrot.lane.b32.xlu1 %v1643_v9, %s2779_s1  ;;  %v1761_v24 = vadd.f32 0.5, %v1759_v19 }
0x1465   :  { %v1794_v21 = vpop.permute.xlu0 %1793 }
0x1466   :  { %v1798_v25 = vmul.f32 %v1794_v21, %v1762_v20  ;;  %v1792_v27 = vpop.permute.xlu1 %1791 }
0x1467   :  { %v1797_v29 = vmul.f32 %v1792_v27, %v1761_v24 }
0x1468   :  { %1803 = vrot.lane.b32.xlu0 %v1798_v25, %s2779_s1 }
0x1469   :  { %1801 = vrot.lane.b32.xlu1 %v1797_v29, %s2779_s1  ;;  %v1648_v42 = vpop.permute.xlu0 %1647 }
0x146a   :  { %v1646_v31 = vpop.permute.xlu1 %1645  ;;  %v1652_v32 = vadd.f32 %v1648_v42, %v2808_v22 }
0x146b   :  { %v1651_v33 = vadd.f32 %v1646_v31, %v2810_v23 }
0x146c   :  { %1749 = vrot.lane.b32.xlu0 %v1746_v30, %s2780_s20  ;;  %v1764_v34 = vmul.f32 0.5, %v1652_v32 }
0x146d   :  { %1747 = vrot.lane.b32.xlu1 %v1745_v39, %s2780_s20  ;;  %v1763_v35 = vmul.f32 0.5, %v1651_v33 }
0x146e   :  { %2697 = vtanh.f32 %v1764_v34 }
0x146f   :  { %2699 = vtanh.f32 %v1763_v35 }
0x147b   :  { %v2698_v36 = vpop.eup %2697 }
0x147c   :  { %v2700_v37 = vpop.eup %2699  ;;  %v1768_v38 = vmul.f32 0.5, %v2698_v36 }
0x147d   :  { %v1767_v40 = vmul.f32 0.5, %v2700_v37 }
0x147e   :  { %v1770_v44 = vadd.f32 0.5, %v1768_v38 }
0x147f   :  { %v1769_v0 = vadd.f32 0.5, %v1767_v40 }
0x1480   :  { %v1788_v57 = vmul.f32 %v1784_v48, %v1770_v44 }
0x1481   :  { %v1787_v46 = vmul.f32 %v1783_v45, %v1769_v0 }
0x14da   :  { %v1804_v59 = vpop.permute.xlu0 %1803 }
0x14db   :  { %v3208_v47 = vadd.f32 %v1804_v59, %v1788_v57  ;;  %v1802_v49 = vpop.permute.xlu1 %1801 }
0x14dc   :  { %v3210_v50 = vadd.f32 %v1802_v49, %v1787_v46 }
0x14dd   :  { %2701 = vtanh.f32 %v3208_v47 }
0x14de   :  { %2703 = vtanh.f32 %v3210_v50  ;;  %v1750_v11 = vpop.permute.xlu0 %1749 }
0x14df   :  { %v1748_v14 = vpop.permute.xlu1 %1747  ;;  %v1754_v55 = vadd.f32 %v1750_v11, %v2808_v22 }
0x14e0   :  { %v1753_v56 = vadd.f32 %v1748_v14, %v2810_v23 }
0x14e1   :  { %v1774_v4 = vmul.f32 0.5, %v1754_v55 }
0x14e2   :  { %v1773_v52 = vmul.f32 0.5, %v1753_v56 }
0x14e3   :  { %2705 = vtanh.f32 %v1774_v4 }
0x14e4   :  { %2707 = vtanh.f32 %v1773_v52 }
0x14ea   :  { %v2702_v53 = vpop.eup %2701 }
0x14eb   :  { %v2704_v54 = vpop.eup %2703  ;;  %1815 = vrot.lane.b32.xlu0 %v2702_v53, %s2778_s0 }
0x14ec   :  { %1813 = vrot.lane.b32.xlu1 %v2704_v54, %s2778_s0 }
0x14f0   :  { %v2706_v58 = vpop.eup %2705 }
0x14f1   :  { %v2708_v61 = vpop.eup %2707  ;;  %v1778_v62 = vmul.f32 0.5, %v2706_v58 }
0x14f2   :  { %v1777_v12 = vmul.f32 0.5, %v2708_v61 }
0x14f3   :  { %v1780_v15 = vadd.f32 0.5, %v1778_v62 }
0x14f4   :  { %v1779_v1 = vadd.f32 0.5, %v1777_v12 }
0x155d   :  { %v1816_v63 = vpop.permute.xlu0 %1815 }
0x155e   :  { %v1820_v2 = vmul.f32 %v1816_v63, %v1780_v15  ;;  %v1814_v7 = vpop.permute.xlu1 %1813 }
0x155f   :  { %v1819_v8 = vmul.f32 %v1814_v7, %v1779_v1 }
0x1560   :  { %v1822_v9 = vpack.c.bf16 %v1820_v2, %v1820_v2 }
0x1561   :  { %v1821_v10 = vpack.c.bf16 %v1819_v8, %v1819_v8 }
0x1562   :  { %v1826_v13 = vunpack.c.l.b16 %v1822_v9 }
0x1563   :  { %v1825_v16 = vunpack.c.l.b16 %v1821_v10 }
0x1564   :  { %v1828_v17 = vrot.slane %v1826_v13, 5 }
0x1565   :  { %v1827_v26 = vrot.slane %v1825_v16, 6 }
0x1567   :  { %v1829_v28 = vsel %vm126_vm1, %v1828_v17, %v1827_v26 }
0x1568   :  { %v1830_v41 = vpack.c.b16 %v1829_v28, %v1829_v28  ;;  %v2065_v28 = vrot.slane %v3208_v47, 7  ;;  %v2102_v47 = vld [vmem:[#allocation2 + $0x30] sm:$0xff] }
0x156a   :  { %1831 = vrot.lane.b32.xlu1 %v1830_v41, %s2779_s1  ;;  %v2064_v41 = vrot.slane %v3210_v50, 7 }
0x15dc   :  { %v1832_v43 = vpop.permute.xlu1 %1831 }
0x15dd   :  { %2524 = vmatmul.mubr.msk.bf16.vlgmr.msra.gmra.mxu0 %vm131_vm2, %v1832_v43  ;;  %2532 = vmatmul.mubr.msk.bf16.vlgmr.msra.gmra.mxu1 %vm131_vm2, %v1832_v43 }
0x15de   :  { %2536 = vmatpush3.bf16.msra.mxu0 %v2848_v60  ;;  %2544 = vmatpush3.bf16.msra.mxu1 %v2875_v5 }
0x15df   :  { %2537 = vmatprep.subr.bf16.mxu0 %v2781_v51  ;;  %2545 = vmatprep.subr.bf16.mxu1 %v2781_v51 }
0x15e0   :  { %2539 = vmatprep.mubr.msk.bf16.mxu0 %vm2782_vm0, %v2781_v51  ;;  %2547 = vmatprep.mubr.msk.bf16.mxu1 %vm2782_vm0, %v2781_v51 }
0x15e2   :  { %2538 = vmatpush3.bf16.msra.mxu0 %v2867_v3  ;;  %2546 = vmatpush3.bf16.msra.mxu1 %v2887_v6 }
0x15e3   :  { %2551 = vmatprep.subr.mxu0 %v2781_v51 }
0x15e5   :  { %2540 = vmatmul.mubr.msk.bf16.vlgmr.msra.gmra.mxu0 %vm131_vm2, %v1832_v43  ;;  %2548 = vmatmul.mubr.msk.bf16.vlgmr.msra.gmra.mxu1 %vm131_vm2, %v1832_v43 }
0x15e6   :  { %2559 = vmatprep.mubr.msk.f32.mxu0 %vm2782_vm0, %v2781_v51 }
0x169d   :  { %v1870_v60 = vpop.f32.mrf.mxu0  ;;  %v1917_v5 = vpop.f32.mrf.mxu1 }
0x169e   :  { %v1925_v44 = vrot.slane %v1917_v5, 2  ;;  %v1924_v0 = vrot.slane %v1917_v5, 1  ;;  %v1878_v48 = vrot.slane %v1870_v60, 2  ;;  %v1877_v45 = vrot.slane %v1870_v60, 1 }
0x169f   :  { %v2525_v18 = vpop.f32.mrf.mxu0  ;;  %v2533_v19 = vpop.f32.mrf.mxu1 }
0x16a0   :  { %v1882_v57 = vadd.f32 %v1878_v48, %v2808_v22  ;;  %v1881_v59 = vadd.f32 %v1877_v45, %v2810_v23  ;;  %v2236_v48 = vld [vmem:[#allocation2 + $0x50] ss:$0 sm:$0xff] }
0x16a1   :  { %v1873_v20 = vpop.f32.mrf.mxu0  ;;  %v1920_v21 = vpop.f32.mrf.mxu1 }
0x16a2   :  { %v2037_v46 = vmul.f32 0.5, %v1882_v57  ;;  %v2036_v49 = vmul.f32 0.5, %v1881_v59  ;;  %v2105_v21 = vld [vmem:[#allocation2 + $0x48] sm:$0xff] }
0x16a3   :  { %v2526_v24 = vpop.f32.mrf.mxu0  ;;  %v2534_v25 = vpop.f32.mrf.mxu1  ;;  %2552 = vmatpush3.msra.mxu0 %v2105_v21 }
0x16a4   :  { %v2104_v24 = vld [vmem:[#allocation2 + $0x40] sm:$0xff]  ;;  %2553 = vmatprep.subr.mxu0 %v2781_v51  ;;  %v2103_v25 = vld [vmem:[#allocation2 + $0x38] sm:$0xff] }
0x16a5   :  { %v1968_v3 = vpop.f32.mrf.mxu0  ;;  %v2019_v27 = vpop.f32.mrf.mxu1  ;;  %2554 = vmatpush3.msra.mxu0 %v2104_v24 }
0x16a6   :  { %v1975_v6 = vrot.slane %v1968_v3, 1  ;;  %v1976_v29 = vrot.slane %v1968_v3, 2  ;;  %v2027_v62 = vrot.slane %v2019_v27, 2  ;;  %v2026_v12 = vrot.slane %v2019_v27, 1  ;;  %2555 = vmatprep.subr.mxu0 %v2781_v51 }
0x16a7   :  { %v2541_v30 = vpop.f32.mrf.mxu0  ;;  %v2549_v39 = vpop.f32.mrf.mxu1  ;;  %2556 = vmatpush3.msra.mxu0 %v2103_v25 }
0x16a8   :  { %1979 = vrot.lane.b32.xlu1 %v1976_v29, %s2778_s0  ;;  %1977 = vrot.lane.b32.xlu0 %v1975_v6, %s2778_s0 }
0x16a9   :  { %v1971_v42 = vpop.f32.mrf.mxu0  ;;  %v2022_v31 = vpop.f32.mrf.mxu1  ;;  %2557 = vmatprep.subr.mxu0 %v2781_v51 }
0x16aa   :  { %2558 = vmatpush3.msra.mxu0 %v2102_v47 }
0x16ab   :  { %v2542_v32 = vpop.f32.mrf.mxu0  ;;  %v2550_v33 = vpop.f32.mrf.mxu1 }
0x171a   :  { %v1980_v34 = vpop.permute.xlu1 %1979  ;;  %v1978_v35 = vpop.permute.xlu0 %1977 }
0x171b   :  { %v1984_v36 = vadd.f32 %v1980_v34, %v2808_v22  ;;  %v1983_v37 = vadd.f32 %v1978_v35, %v2810_v23 }
0x171d   :  { %2709 = vtanh.f32 %v1984_v36 }
0x171e   :  { %2711 = vtanh.f32 %v1983_v37 }
0x171f   :  { %2713 = vtanh.f32 %v2037_v46 }
0x1720   :  { %2715 = vtanh.f32 %v2036_v49 }
0x172a   :  { %v2710_v38 = vpop.eup %2709 }
0x172b   :  { %v2712_v40 = vpop.eup %2711  ;;  %2074 = vrot.lane.b32.xlu1 %v2710_v38, %s2778_s0 }
0x172c   :  { %2072 = vrot.lane.b32.xlu0 %v2712_v40, %s2778_s0  ;;  %v2714_v53 = vpop.eup %2713 }
0x172d   :  { %v2716_v54 = vpop.eup %2715  ;;  %v2041_v11 = vmul.f32 0.5, %v2714_v53 }
0x172e   :  { %v2040_v14 = vmul.f32 0.5, %v2716_v54 }
0x172f   :  { %1928 = vrot.lane.b32.xlu1 %v1925_v44, %s2779_s1  ;;  %v2043_v55 = vadd.f32 0.5, %v2041_v11 }
0x1730   :  { %1926 = vrot.lane.b32.xlu0 %v1924_v0, %s2779_s1  ;;  %v2042_v4 = vadd.f32 0.5, %v2040_v14 }
0x179d   :  { %v2075_v56 = vpop.permute.xlu1 %2074 }
0x179e   :  { %v2079_v52 = vmul.f32 %v2075_v56, %v2043_v55  ;;  %v2073_v58 = vpop.permute.xlu0 %2072 }
0x179f   :  { %v2078_v61 = vmul.f32 %v2073_v58, %v2042_v4 }
0x17a0   :  { %2084 = vrot.lane.b32.xlu1 %v2079_v52, %s2779_s1 }
0x17a1   :  { %2082 = vrot.lane.b32.xlu0 %v2078_v61, %s2779_s1  ;;  %v1929_v15 = vpop.permute.xlu1 %1928 }
0x17a2   :  { %v1927_v63 = vpop.permute.xlu0 %1926  ;;  %v1933_v1 = vadd.f32 %v1929_v15, %v2808_v22 }
0x17a3   :  { %v1932_v2 = vadd.f32 %v1927_v63, %v2810_v23 }
0x17a4   :  { %2030 = vrot.lane.b32.xlu1 %v2027_v62, %s2780_s20  ;;  %v2045_v7 = vmul.f32 0.5, %v1933_v1 }
0x17a5   :  { %2028 = vrot.lane.b32.xlu0 %v2026_v12, %s2780_s20  ;;  %v2044_v8 = vmul.f32 0.5, %v1932_v2 }
0x17a6   :  { %2717 = vtanh.f32 %v2045_v7 }
0x17a7   :  { %2719 = vtanh.f32 %v2044_v8 }
0x17b3   :  { %v2718_v9 = vpop.eup %2717 }
0x17b4   :  { %v2720_v10 = vpop.eup %2719  ;;  %v2049_v13 = vmul.f32 0.5, %v2718_v9 }
0x17b5   :  { %v2048_v16 = vmul.f32 0.5, %v2720_v10 }
0x17b6   :  { %v2051_v17 = vadd.f32 0.5, %v2049_v13 }
0x17b7   :  { %v2050_v26 = vadd.f32 0.5, %v2048_v16 }
0x17b8   :  { %v2069_v43 = vmul.f32 %v2065_v28, %v2051_v17 }
0x17b9   :  { %v2068_v5 = vmul.f32 %v2064_v41, %v2050_v26 }
0x1812   :  { %v2085_v60 = vpop.permute.xlu1 %2084 }
0x1813   :  { %v2089_v18 = vadd.f32 %v2085_v60, %v2069_v43  ;;  %v2083_v19 = vpop.permute.xlu0 %2082 }
0x1814   :  { %v2088_v20 = vadd.f32 %v2083_v19, %v2068_v5 }
0x1815   :  { %2721 = vtanh.f32 %v2089_v18 }
0x1816   :  { %2723 = vtanh.f32 %v2088_v20  ;;  %v2031_v27 = vpop.permute.xlu1 %2030 }
0x1817   :  { %v2029_v6 = vpop.permute.xlu0 %2028  ;;  %v2035_v29 = vadd.f32 %v2031_v27, %v2808_v22 }
0x1818   :  { %v2034_v30 = vadd.f32 %v2029_v6, %v2810_v23 }
0x1819   :  { %v2055_v39 = vmul.f32 0.5, %v2035_v29 }
0x181a   :  { %v2054_v42 = vmul.f32 0.5, %v2034_v30 }
0x181b   :  { %2725 = vtanh.f32 %v2055_v39 }
0x181c   :  { %2727 = vtanh.f32 %v2054_v42 }
0x1822   :  { %v2722_v50 = vpop.eup %2721 }
0x1823   :  { %v2724_v3 = vpop.eup %2723  ;;  %2096 = vrot.lane.b32.xlu1 %v2722_v50, %s2778_s0 }
0x1824   :  { %2094 = vrot.lane.b32.xlu0 %v2724_v3, %s2778_s0 }
0x1828   :  { %v2726_v31 = vpop.eup %2725 }
0x1829   :  { %v2728_v32 = vpop.eup %2727  ;;  %v2059_v33 = vmul.f32 0.5, %v2726_v31 }
0x182a   :  { %v2058_v51 = vmul.f32 0.5, %v2728_v32 }
0x182b   :  { %v2061_v34 = vadd.f32 0.5, %v2059_v33 }
0x182c   :  { %v2060_v36 = vadd.f32 0.5, %v2058_v51 }
0x1895   :  { %v2097_v35 = vpop.permute.xlu1 %2096 }
0x1896   :  { %v2101_v37 = vmul.f32 %v2097_v35, %v2061_v34  ;;  %v2095_v38 = vpop.permute.xlu0 %2094 }
0x1897   :  { %v2100_v40 = vmul.f32 %v2095_v38, %v2060_v36 }
0x1898   :  { %v2114_v44 = vrot.slane %v2101_v37, 6 }
0x1899   :  { %v2113_v0 = vrot.slane %v2100_v40, 7 }
0x189b   :  { %v2115_v22 = vsel %vm126_vm1, %v2114_v44, %v2113_v0 }
0x189c   :  { %2116 = vrot.lane.b32.xlu0 %v2115_v22, %s2779_s1 }
0x190e   :  { %v2117_v23 = vpop.permute.xlu0 %2116 }
0x190f   :  { %2560 = vmatmul.mubr.msk.f32.vlgmr.msra.gmra.mxu0 %vm131_vm2, %v2117_v23 }
0x19cf   :  { %v2186_v45 = vpop.f32.mrf.mxu0 }
0x19d0   :  { %v2187_v57 = vadd.f32 %v2236_v48, %v2186_v45 }
0x19d1   :  { %v2561_v59 = vpop.f32.mrf.mxu0 }
0x19d2   :  { %2191 = vst.msk [vmem:[#allocation5] sm:$0x3] %vm2190_vm3, %v2187_v57 }
0x19d3   :  { %2760 = shalt.err (!%p2757_p9)
}
0x19d4   :  { %2201 = dma.vmem_to_hbm [thread:$0]  %s2199_s22, 32, %s3270_s2, [#allocation4]  }
0x19d5   :  { %2771 = dma.done.wait [#allocation4], 32  }
0x19d6   :  { %2772 = vsyncadd [#allocation4], 4294967264 }
0x19d7   :  { %2205 = vsyncpa [#allocation3], 1 }
0x19d8   :  { %2206 = vsyncpa [#allocation4], 1 }

</bundles_post_ra>
